<compile_context>
chip_gen: v6e
topology: v6e:2x2x1
jax: 0.10.0
libtpu: 0.0.40
codegen_flags: <defaults>
</compile_context>

<pallas_src>
import math
from functools import partial

import jax
import jax.numpy as jnp
from jax.experimental import pallas as pl
from jax.experimental.pallas import tpu as pltpu


STACKED_ORDER = ["wqkv", "bqkv", "wo", "bo", "ln1w", "ln1b",
                 "w1", "b1", "w2", "b2", "ln2w", "ln2b"]


def _layer_norm(x, w, b, eps=1e-5):
    mu = jnp.mean(x, axis=-1, keepdims=True)
    xc = x - mu
    var = jnp.mean(xc * xc, axis=-1, keepdims=True)
    return xc * jax.lax.rsqrt(var + eps) * w + b


def _encoder_stack_kernel(num_heads,
                          x_ref, mask_ref,
                          wqkv_ref, bqkv_ref, wo_ref, bo_ref,
                          ln1w_ref, ln1b_ref,
                          w1_ref, b1_ref, w2_ref, b2_ref,
                          ln2w_ref, ln2b_ref,
                          o_ref):
    layer = pl.program_id(1)

    # Layer 0: seed the carried activation (output block is resident across the
    # layer axis and serves as the layer-to-layer carry).
    @pl.when(layer == 0)
    def _():
        o_ref[...] = x_ref[...]

    x = o_ref[...].astype(jnp.float32)          # (Bt, S, D)
    Bt, S, D = x.shape
    H = num_heads
    dh = D // H
    scale = 1.0 / math.sqrt(dh)

    # Fold batch into the matmul M dimension for QKV / output / FFN projections.
    x2d = x.reshape(Bt * S, D)
    xb = x2d.astype(jnp.bfloat16)
    mask = mask_ref[...]                        # (S, S) additive, f32

    wqkv = wqkv_ref[0]                          # (D, 3D) bf16
    wo = wo_ref[0]                              # (D, D)  bf16

    # Fused Q/K/V projection: one MXU matmul with N = 3D, f32 accumulation.
    qkv = jnp.dot(xb, wqkv, preferred_element_type=jnp.float32) + bqkv_ref[0]

    # Multi-head attention. Batch tiles / heads are unrolled statically; each
    # head's context is pushed through its (dh, D) row-slice of W_O and summed.
    attn_rows = []
    for b in range(Bt):
        r0 = b * S
        acc_b = None
        for h in range(H):
            c0 = h * dh
            qh = qkv[r0:r0 + S, c0:c0 + dh].astype(jnp.bfloat16)
            kh = qkv[r0:r0 + S, D + c0:D + c0 + dh].astype(jnp.bfloat16)
            vh = qkv[r0:r0 + S, 2 * D + c0:2 * D + c0 + dh].astype(jnp.bfloat16)

            s = jax.lax.dot_general(qh, kh, (((1,), (1,)), ((), ())),
                                    preferred_element_type=jnp.float32)
            s = s * scale + mask
            s = s - jnp.max(s, axis=-1, keepdims=True)
            p = jnp.exp(s)
            p = p * pl.reciprocal(jnp.sum(p, axis=-1, keepdims=True), approx=True)

            ctx = jnp.dot(p.astype(jnp.bfloat16), vh,
                          preferred_element_type=jnp.float32)          # (S, dh)
            part = jnp.dot(ctx.astype(jnp.bfloat16), wo[c0:c0 + dh, :],
                           preferred_element_type=jnp.float32)          # (S, D)
            acc_b = part if acc_b is None else acc_b + part
        attn_rows.append(acc_b)
    attn = attn_rows[0] if Bt == 1 else jnp.concatenate(attn_rows, axis=0)
    attn = attn + bo_ref[0]

    # Residual + post-norm (f32 elementwise math).
    h1 = _layer_norm(x2d + attn, ln1w_ref[0], ln1b_ref[0])

    # Feed-forward: Linear -> ReLU -> Linear (bf16 MXU operands, f32 accum).
    ff = jnp.dot(h1.astype(jnp.bfloat16), w1_ref[0],
                 preferred_element_type=jnp.float32) + b1_ref[0]
    ff = jnp.maximum(ff, 0.0)
    ff = jnp.dot(ff.astype(jnp.bfloat16), w2_ref[0],
                 preferred_element_type=jnp.float32) + b2_ref[0]
    h2 = _layer_norm(h1 + ff, ln2w_ref[0], ln2b_ref[0])

    o_ref[...] = h2.reshape(Bt, S, D).astype(o_ref.dtype)


def _stack_and_pack(blocks_params):
    """Stack per-block params along a leading layer axis; pack Wq|Wk|Wv; bf16 weights."""
    def stack(name):
        return jnp.stack([p[name] for p in blocks_params], axis=0)

    wqkv = jnp.concatenate([stack("wq"), stack("wk"), stack("wv")], axis=-1)
    bqkv = jnp.concatenate([stack("bq"), stack("bk"), stack("bv")], axis=-1)
    return {
        "wqkv": wqkv.astype(jnp.bfloat16),
        "bqkv": bqkv.astype(jnp.float32),
        "wo": stack("wo").astype(jnp.bfloat16),
        "bo": stack("bo").astype(jnp.float32),
        "ln1w": stack("ln1w").astype(jnp.float32),
        "ln1b": stack("ln1b").astype(jnp.float32),
        "w1": stack("w1").astype(jnp.bfloat16),
        "b1": stack("b1").astype(jnp.float32),
        "w2": stack("w2").astype(jnp.bfloat16),
        "b2": stack("b2").astype(jnp.float32),
        "ln2w": stack("ln2w").astype(jnp.float32),
        "ln2b": stack("ln2b").astype(jnp.float32),
    }


def transformer_encoder(src, src_mask, blocks_params, num_heads,
                        *, rows_per_step=256, vmem_limit_bytes=32 * 1024 * 1024):
    """Mirrors TransformerEncoder.forward: all blocks fused into one pallas_call."""
    B, S, D = src.shape
    num_layers = len(blocks_params)
    if src_mask is None:
        src_mask = jnp.zeros((S, S), jnp.float32)
    src_mask = src_mask.astype(jnp.float32)

    stacked = _stack_and_pack(blocks_params)
    ordered = [stacked[k] for k in STACKED_ORDER]

    # Batch tile: pack multiple batch elements per grid step so matmul M >= ~256
    # where possible; must divide B.
    bt = min(B, max(1, rows_per_step // S))
    while B % bt:
        bt -= 1

    def param_spec(a):
        return pl.BlockSpec((1,) + a.shape[1:], lambda b, l: (l, 0, 0))

    kernel = partial(_encoder_stack_kernel, num_heads)
    return pl.pallas_call(
        kernel,
        out_shape=jax.ShapeDtypeStruct((B, S, D), src.dtype),
        grid=(B // bt, num_layers),
        in_specs=[pl.BlockSpec((bt, S, D), lambda b, l: (b, 0, 0)),
                  pl.BlockSpec((S, S), lambda b, l: (0, 0))]
                 + [param_spec(a) for a in ordered],
        out_specs=pl.BlockSpec((bt, S, D), lambda b, l: (b, 0, 0)),
        compiler_params=pltpu.CompilerParams(
            dimension_semantics=("parallel", "arbitrary"),
            vmem_limit_bytes=vmem_limit_bytes),
    )(src, src_mask, *ordered)


def init_block_params(key, d_model, d_ff):
    # NOTE: weights are stored (in, out) so the kernel does x @ W; parameters
    # imported from PyTorch nn.Linear ((out, in)) must be transposed.
    ks = jax.random.split(key, 6)
    s = 0.02
    f32 = jnp.float32
    return {
        "wq": jax.random.normal(ks[0], (d_model, d_model), f32) * s,
        "wk": jax.random.normal(ks[1], (d_model, d_model), f32) * s,
        "wv": jax.random.normal(ks[2], (d_model, d_model), f32) * s,
        "wo": jax.random.normal(ks[3], (d_model, d_model), f32) * s,
        "bq": jnp.zeros((1, d_model), f32),
        "bk": jnp.zeros((1, d_model), f32),
        "bv": jnp.zeros((1, d_model), f32),
        "bo": jnp.zeros((1, d_model), f32),
        "ln1w": jnp.ones((1, d_model), f32),
        "ln1b": jnp.zeros((1, d_model), f32),
        "w1": jax.random.normal(ks[4], (d_model, d_ff), f32) * s,
        "b1": jnp.zeros((1, d_ff), f32),
        "w2": jax.random.normal(ks[5], (d_ff, d_model), f32) * s,
        "b2": jnp.zeros((1, d_model), f32),
        "ln2w": jnp.ones((1, d_model), f32),
        "ln2b": jnp.zeros((1, d_model), f32),
    }


def _reference_encoder(src, src_mask, blocks_params, num_heads):
    """Pure-JAX f32 reference of the same post-norm encoder stack."""
    x = src
    B, S, D = x.shape
    dh = D // num_heads
    for p in blocks_params:
        q = (x @ p["wq"] + p["bq"]).reshape(B, S, num_heads, dh)
        k = (x @ p["wk"] + p["bk"]).reshape(B, S, num_heads, dh)
        v = (x @ p["wv"] + p["bv"]).reshape(B, S, num_heads, dh)
        s = jnp.einsum("bqhd,bkhd->bhqk", q, k) / math.sqrt(dh) + src_mask
        a = jax.nn.softmax(s, axis=-1)
        ctx = jnp.einsum("bhqk,bkhd->bqhd", a, v).reshape(B, S, D)
        attn = ctx @ p["wo"] + p["bo"]
        x = _layer_norm(x + attn, p["ln1w"], p["ln1b"])
        ff = jnp.maximum(x @ p["w1"] + p["b1"], 0.0) @ p["w2"] + p["b2"]
        x = _layer_norm(x + ff, p["ln2w"], p["ln2b"])
    return x


if __name__ == "__main__":
    B, S, D = 2, 8, 32          # batch, sequence, model dim
    H, DFF = 4, 64              # heads, feed-forward dim
    NUM_BLOCKS = 2

    root = jax.random.PRNGKey(0)
    k_x, k_p = jax.random.split(root)

    src = jax.random.normal(k_x, (B, S, D), jnp.float32)

    # Causal additive mask (S, S): 0 on/below diagonal, -1e9 above.
    row = jax.lax.broadcasted_iota(jnp.int32, (S, S), 0)
    col = jax.lax.broadcasted_iota(jnp.int32, (S, S), 1)
    src_mask = jnp.where(col > row, jnp.float32(-1e9), jnp.float32(0.0))

    blocks_params = [init_block_params(jax.random.fold_in(k_p, i), D, DFF)
                     for i in range(NUM_BLOCKS)]

    out = transformer_encoder(src, src_mask, blocks_params, num_heads=H)
    out = jax.block_until_ready(out)
    assert out.shape == (B, S, D) and out.dtype == jnp.float32
    assert bool(jnp.all(jnp.isfinite(out)))

    # Correctness vs. pure-JAX f32 reference (loose tolerance: kernel uses bf16
    # MXU operands with f32 accumulation).
    ref = _reference_encoder(src, src_mask, blocks_params, H)
    assert float(jnp.max(jnp.abs(out - ref))) < 0.1

    print("KERNEL_OK")
</pallas_src>

<mosaic_0001>
module attributes {stable_mosaic.version = 11 : i64} {
  func.func @_encoder_stack_kernel(%arg0: i32, %arg1: i32, %arg2: memref<2x8x32xf32, #tpu.memory_space<vmem>>, %arg3: memref<8x8xf32, #tpu.memory_space<vmem>>, %arg4: memref<1x32x96xbf16, #tpu.memory_space<vmem>>, %arg5: memref<1x1x96xf32, #tpu.memory_space<vmem>>, %arg6: memref<1x32x32xbf16, #tpu.memory_space<vmem>>, %arg7: memref<1x1x32xf32, #tpu.memory_space<vmem>>, %arg8: memref<1x1x32xf32, #tpu.memory_space<vmem>>, %arg9: memref<1x1x32xf32, #tpu.memory_space<vmem>>, %arg10: memref<1x32x64xbf16, #tpu.memory_space<vmem>>, %arg11: memref<1x1x64xf32, #tpu.memory_space<vmem>>, %arg12: memref<1x64x32xbf16, #tpu.memory_space<vmem>>, %arg13: memref<1x1x32xf32, #tpu.memory_space<vmem>>, %arg14: memref<1x1x32xf32, #tpu.memory_space<vmem>>, %arg15: memref<1x1x32xf32, #tpu.memory_space<vmem>>, %arg16: memref<2x8x32xf32, #tpu.memory_space<vmem>>) attributes {dimension_semantics = [#tpu.dimension_semantics<parallel>, #tpu.dimension_semantics<arbitrary>], iteration_bounds = array<i64: 1, 2>, scalar_prefetch = 0 : i64, scratch_operands = 0 : i64, tpu.core_type = #tpu.core_type<tc>, window_params = [{transform_indices = @transform_0, window_bounds = array<i64: 2, 8, 32>}, {pipeline_mode = #tpu.pipeline_mode<synchronous>, transform_indices = @transform_1, window_bounds = array<i64: 8, 8>}, {transform_indices = @transform_2, window_bounds = array<i64: 1, 32, 96>}, {transform_indices = @transform_3, window_bounds = array<i64: 1, 1, 96>}, {transform_indices = @transform_4, window_bounds = array<i64: 1, 32, 32>}, {transform_indices = @transform_5, window_bounds = array<i64: 1, 1, 32>}, {transform_indices = @transform_6, window_bounds = array<i64: 1, 1, 32>}, {transform_indices = @transform_7, window_bounds = array<i64: 1, 1, 32>}, {transform_indices = @transform_8, window_bounds = array<i64: 1, 32, 64>}, {transform_indices = @transform_9, window_bounds = array<i64: 1, 1, 64>}, {transform_indices = @transform_10, window_bounds = array<i64: 1, 64, 32>}, {transform_indices = @transform_11, window_bounds = array<i64: 1, 1, 32>}, {transform_indices = @transform_12, window_bounds = array<i64: 1, 1, 32>}, {transform_indices = @transform_13, window_bounds = array<i64: 1, 1, 32>}, {transform_indices = @transform_14, window_bounds = array<i64: 2, 8, 32>}]} {
    %c0_i32 = arith.constant 0 : i32
    %0 = arith.cmpi eq, %arg1, %c0_i32 : i32
    %1 = arith.extui %0 : i1 to i32
    %c0_i32_0 = arith.constant 0 : i32
    %2 = arith.cmpi ne, %1, %c0_i32_0 : i32
    scf.if %2 {
      %c0_105 = arith.constant 0 : index
      %c0_106 = arith.constant 0 : index
      %c0_107 = arith.constant 0 : index
      %297 = vector.load %arg2[%c0_105, %c0_106, %c0_107] : memref<2x8x32xf32, #tpu.memory_space<vmem>>, vector<2x8x32xf32>
      %c0_108 = arith.constant 0 : index
      %c0_109 = arith.constant 0 : index
      %c0_110 = arith.constant 0 : index
      %298 = vector.load %arg16[%c0_108, %c0_109, %c0_110] : memref<2x8x32xf32, #tpu.memory_space<vmem>>, vector<2x8x32xf32>
      tpu.vector_store %arg16[%c0_108, %c0_109, %c0_110], %297 {strides = array<i32>} : memref<2x8x32xf32, #tpu.memory_space<vmem>>, vector<2x8x32xf32>,
    } else {
    }
    %c0 = arith.constant 0 : index
    %c0_1 = arith.constant 0 : index
    %c0_2 = arith.constant 0 : index
    %3 = vector.load %arg16[%c0, %c0_1, %c0_2] : memref<2x8x32xf32, #tpu.memory_space<vmem>>, vector<2x8x32xf32>
    %4 = vector.shape_cast %3 : vector<2x8x32xf32> to vector<16x32xf32>
    %5 = arith.truncf %4 : vector<16x32xf32> to vector<16x32xbf16>
    %c0_3 = arith.constant 0 : index
    %c0_4 = arith.constant 0 : index
    %6 = vector.load %arg3[%c0_3, %c0_4] : memref<8x8xf32, #tpu.memory_space<vmem>>, vector<8x8xf32>
    %c0_5 = arith.constant 0 : index
    %c0_6 = arith.constant 0 : index
    %c0_7 = arith.constant 0 : index
    %7 = vector.load %arg4[%c0_5, %c0_6, %c0_7] : memref<1x32x96xbf16, #tpu.memory_space<vmem>>, vector<1x32x96xbf16>
    %8 = vector.shape_cast %7 : vector<1x32x96xbf16> to vector<32x96xbf16>
    %c0_8 = arith.constant 0 : index
    %c0_9 = arith.constant 0 : index
    %c0_10 = arith.constant 0 : index
    %9 = vector.load %arg6[%c0_8, %c0_9, %c0_10] : memref<1x32x32xbf16, #tpu.memory_space<vmem>>, vector<1x32x32xbf16>
    %10 = vector.shape_cast %9 : vector<1x32x32xbf16> to vector<32x32xbf16>
    %cst = arith.constant dense<0.000000e+00> : vector<16x96xf32>
    %11 = tpu.matmul %5, %8, %cst {dimension_numbers = #tpu.dot_dimension_numbers<[1], [0], [0], [1], [0, 0, 1, 1], [], []>} : vector<16x32xbf16>, vector<32x96xbf16>, vector<16x96xf32> -> vector<16x96xf32>
    %c0_11 = arith.constant 0 : index
    %c0_12 = arith.constant 0 : index
    %c0_13 = arith.constant 0 : index
    %12 = vector.load %arg5[%c0_11, %c0_12, %c0_13] : memref<1x1x96xf32, #tpu.memory_space<vmem>>, vector<1x1x96xf32>
    %13 = vector.shape_cast %12 : vector<1x1x96xf32> to vector<1x96xf32>
    %14 = vector.broadcast %13 : vector<1x96xf32> to vector<16x96xf32>
    %15 = arith.addf %11, %14 : vector<16x96xf32>
    %16 = vector.extract_strided_slice %15 {offsets = [0, 0], sizes = [8, 8], strides = [1, 1]} : vector<16x96xf32> to vector<8x8xf32>
    %17 = arith.truncf %16 : vector<8x8xf32> to vector<8x8xbf16>
    %18 = vector.extract_strided_slice %15 {offsets = [0, 32], sizes = [8, 8], strides = [1, 1]} : vector<16x96xf32> to vector<8x8xf32>
    %19 = arith.truncf %18 : vector<8x8xf32> to vector<8x8xbf16>
    %20 = vector.extract_strided_slice %15 {offsets = [0, 64], sizes = [8, 8], strides = [1, 1]} : vector<16x96xf32> to vector<8x8xf32>
    %21 = arith.truncf %20 : vector<8x8xf32> to vector<8x8xbf16>
    %cst_14 = arith.constant dense<0.000000e+00> : vector<8x8xf32>
    %22 = tpu.matmul %17, %19, %cst_14 {dimension_numbers = #tpu.dot_dimension_numbers<[1], [1], [0], [0], [0, 0, 1, 0], [], []>} : vector<8x8xbf16>, vector<8x8xbf16>, vector<8x8xf32> -> vector<8x8xf32>
    %cst_15 = arith.constant 0.353553385 : f32
    %23 = vector.broadcast %cst_15 : f32 to vector<8x8xf32>
    %24 = arith.mulf %22, %23 : vector<8x8xf32>
    %25 = arith.addf %24, %6 : vector<8x8xf32>
    %cst_16 = arith.constant dense<0xFF800000> : vector<8xf32>
    %26 = vector.multi_reduction <maximumf>, %25, %cst_16 [1] : vector<8x8xf32> to vector<8xf32>
    %27 = vector.shape_cast %26 : vector<8xf32> to vector<8x1xf32>
    %28 = vector.broadcast %27 : vector<8x1xf32> to vector<8x8xf32>
    %29 = arith.subf %25, %28 : vector<8x8xf32>
    %30 = math.exp %29 : vector<8x8xf32>
    %cst_17 = arith.constant dense<0.000000e+00> : vector<8xf32>
    %31 = vector.multi_reduction <add>, %30, %cst_17 [1] : vector<8x8xf32> to vector<8xf32>
    %32 = vector.shape_cast %31 : vector<8xf32> to vector<8x1xf32>
    %33 = tpu.reciprocal %32 {approx = true} : vector<8x1xf32> -> vector<8x1xf32>
    %34 = vector.broadcast %33 : vector<8x1xf32> to vector<8x8xf32>
    %35 = arith.mulf %30, %34 : vector<8x8xf32>
    %36 = arith.truncf %35 : vector<8x8xf32> to vector<8x8xbf16>
    %cst_18 = arith.constant dense<0.000000e+00> : vector<8x8xf32>
    %37 = tpu.matmul %36, %21, %cst_18 {dimension_numbers = #tpu.dot_dimension_numbers<[1], [0], [0], [1], [0, 0, 1, 1], [], []>} : vector<8x8xbf16>, vector<8x8xbf16>, vector<8x8xf32> -> vector<8x8xf32>
    %38 = arith.truncf %37 : vector<8x8xf32> to vector<8x8xbf16>
    %39 = vector.extract_strided_slice %10 {offsets = [0, 0], sizes = [8, 32], strides = [1, 1]} : vector<32x32xbf16> to vector<8x32xbf16>
    %cst_19 = arith.constant dense<0.000000e+00> : vector<8x32xf32>
    %40 = tpu.matmul %38, %39, %cst_19 {dimension_numbers = #tpu.dot_dimension_numbers<[1], [0], [0], [1], [0, 0, 1, 1], [], []>} : vector<8x8xbf16>, vector<8x32xbf16>, vector<8x32xf32> -> vector<8x32xf32>
    %41 = vector.extract_strided_slice %15 {offsets = [0, 8], sizes = [8, 8], strides = [1, 1]} : vector<16x96xf32> to vector<8x8xf32>
    %42 = arith.truncf %41 : vector<8x8xf32> to vector<8x8xbf16>
    %43 = vector.extract_strided_slice %15 {offsets = [0, 40], sizes = [8, 8], strides = [1, 1]} : vector<16x96xf32> to vector<8x8xf32>
    %44 = arith.truncf %43 : vector<8x8xf32> to vector<8x8xbf16>
    %45 = vector.extract_strided_slice %15 {offsets = [0, 72], sizes = [8, 8], strides = [1, 1]} : vector<16x96xf32> to vector<8x8xf32>
    %46 = arith.truncf %45 : vector<8x8xf32> to vector<8x8xbf16>
    %cst_20 = arith.constant dense<0.000000e+00> : vector<8x8xf32>
    %47 = tpu.matmul %42, %44, %cst_20 {dimension_numbers = #tpu.dot_dimension_numbers<[1], [1], [0], [0], [0, 0, 1, 0], [], []>} : vector<8x8xbf16>, vector<8x8xbf16>, vector<8x8xf32> -> vector<8x8xf32>
    %cst_21 = arith.constant 0.353553385 : f32
    %48 = vector.broadcast %cst_21 : f32 to vector<8x8xf32>
    %49 = arith.mulf %47, %48 : vector<8x8xf32>
    %50 = arith.addf %49, %6 : vector<8x8xf32>
    %cst_22 = arith.constant dense<0xFF800000> : vector<8xf32>
    %51 = vector.multi_reduction <maximumf>, %50, %cst_22 [1] : vector<8x8xf32> to vector<8xf32>
    %52 = vector.shape_cast %51 : vector<8xf32> to vector<8x1xf32>
    %53 = vector.broadcast %52 : vector<8x1xf32> to vector<8x8xf32>
    %54 = arith.subf %50, %53 : vector<8x8xf32>
    %55 = math.exp %54 : vector<8x8xf32>
    %cst_23 = arith.constant dense<0.000000e+00> : vector<8xf32>
    %56 = vector.multi_reduction <add>, %55, %cst_23 [1] : vector<8x8xf32> to vector<8xf32>
    %57 = vector.shape_cast %56 : vector<8xf32> to vector<8x1xf32>
    %58 = tpu.reciprocal %57 {approx = true} : vector<8x1xf32> -> vector<8x1xf32>
    %59 = vector.broadcast %58 : vector<8x1xf32> to vector<8x8xf32>
    %60 = arith.mulf %55, %59 : vector<8x8xf32>
    %61 = arith.truncf %60 : vector<8x8xf32> to vector<8x8xbf16>
    %cst_24 = arith.constant dense<0.000000e+00> : vector<8x8xf32>
    %62 = tpu.matmul %61, %46, %cst_24 {dimension_numbers = #tpu.dot_dimension_numbers<[1], [0], [0], [1], [0, 0, 1, 1], [], []>} : vector<8x8xbf16>, vector<8x8xbf16>, vector<8x8xf32> -> vector<8x8xf32>
    %63 = arith.truncf %62 : vector<8x8xf32> to vector<8x8xbf16>
    %64 = vector.extract_strided_slice %10 {offsets = [8, 0], sizes = [8, 32], strides = [1, 1]} : vector<32x32xbf16> to vector<8x32xbf16>
    %cst_25 = arith.constant dense<0.000000e+00> : vector<8x32xf32>
    %65 = tpu.matmul %63, %64, %cst_25 {dimension_numbers = #tpu.dot_dimension_numbers<[1], [0], [0], [1], [0, 0, 1, 1], [], []>} : vector<8x8xbf16>, vector<8x32xbf16>, vector<8x32xf32> -> vector<8x32xf32>
    %66 = arith.addf %40, %65 : vector<8x32xf32>
    %67 = vector.extract_strided_slice %15 {offsets = [0, 16], sizes = [8, 8], strides = [1, 1]} : vector<16x96xf32> to vector<8x8xf32>
    %68 = arith.truncf %67 : vector<8x8xf32> to vector<8x8xbf16>
    %69 = vector.extract_strided_slice %15 {offsets = [0, 48], sizes = [8, 8], strides = [1, 1]} : vector<16x96xf32> to vector<8x8xf32>
    %70 = arith.truncf %69 : vector<8x8xf32> to vector<8x8xbf16>
    %71 = vector.extract_strided_slice %15 {offsets = [0, 80], sizes = [8, 8], strides = [1, 1]} : vector<16x96xf32> to vector<8x8xf32>
    %72 = arith.truncf %71 : vector<8x8xf32> to vector<8x8xbf16>
    %cst_26 = arith.constant dense<0.000000e+00> : vector<8x8xf32>
    %73 = tpu.matmul %68, %70, %cst_26 {dimension_numbers = #tpu.dot_dimension_numbers<[1], [1], [0], [0], [0, 0, 1, 0], [], []>} : vector<8x8xbf16>, vector<8x8xbf16>, vector<8x8xf32> -> vector<8x8xf32>
    %cst_27 = arith.constant 0.353553385 : f32
    %74 = vector.broadcast %cst_27 : f32 to vector<8x8xf32>
    %75 = arith.mulf %73, %74 : vector<8x8xf32>
    %76 = arith.addf %75, %6 : vector<8x8xf32>
    %cst_28 = arith.constant dense<0xFF800000> : vector<8xf32>
    %77 = vector.multi_reduction <maximumf>, %76, %cst_28 [1] : vector<8x8xf32> to vector<8xf32>
    %78 = vector.shape_cast %77 : vector<8xf32> to vector<8x1xf32>
    %79 = vector.broadcast %78 : vector<8x1xf32> to vector<8x8xf32>
    %80 = arith.subf %76, %79 : vector<8x8xf32>
    %81 = math.exp %80 : vector<8x8xf32>
    %cst_29 = arith.constant dense<0.000000e+00> : vector<8xf32>
    %82 = vector.multi_reduction <add>, %81, %cst_29 [1] : vector<8x8xf32> to vector<8xf32>
    %83 = vector.shape_cast %82 : vector<8xf32> to vector<8x1xf32>
    %84 = tpu.reciprocal %83 {approx = true} : vector<8x1xf32> -> vector<8x1xf32>
    %85 = vector.broadcast %84 : vector<8x1xf32> to vector<8x8xf32>
    %86 = arith.mulf %81, %85 : vector<8x8xf32>
    %87 = arith.truncf %86 : vector<8x8xf32> to vector<8x8xbf16>
    %cst_30 = arith.constant dense<0.000000e+00> : vector<8x8xf32>
    %88 = tpu.matmul %87, %72, %cst_30 {dimension_numbers = #tpu.dot_dimension_numbers<[1], [0], [0], [1], [0, 0, 1, 1], [], []>} : vector<8x8xbf16>, vector<8x8xbf16>, vector<8x8xf32> -> vector<8x8xf32>
    %89 = arith.truncf %88 : vector<8x8xf32> to vector<8x8xbf16>
    %90 = vector.extract_strided_slice %10 {offsets = [16, 0], sizes = [8, 32], strides = [1, 1]} : vector<32x32xbf16> to vector<8x32xbf16>
    %cst_31 = arith.constant dense<0.000000e+00> : vector<8x32xf32>
    %91 = tpu.matmul %89, %90, %cst_31 {dimension_numbers = #tpu.dot_dimension_numbers<[1], [0], [0], [1], [0, 0, 1, 1], [], []>} : vector<8x8xbf16>, vector<8x32xbf16>, vector<8x32xf32> -> vector<8x32xf32>
    %92 = arith.addf %66, %91 : vector<8x32xf32>
    %93 = vector.extract_strided_slice %15 {offsets = [0, 24], sizes = [8, 8], strides = [1, 1]} : vector<16x96xf32> to vector<8x8xf32>
    %94 = arith.truncf %93 : vector<8x8xf32> to vector<8x8xbf16>
    %95 = vector.extract_strided_slice %15 {offsets = [0, 56], sizes = [8, 8], strides = [1, 1]} : vector<16x96xf32> to vector<8x8xf32>
    %96 = arith.truncf %95 : vector<8x8xf32> to vector<8x8xbf16>
    %97 = vector.extract_strided_slice %15 {offsets = [0, 88], sizes = [8, 8], strides = [1, 1]} : vector<16x96xf32> to vector<8x8xf32>
    %98 = arith.truncf %97 : vector<8x8xf32> to vector<8x8xbf16>
    %cst_32 = arith.constant dense<0.000000e+00> : vector<8x8xf32>
    %99 = tpu.matmul %94, %96, %cst_32 {dimension_numbers = #tpu.dot_dimension_numbers<[1], [1], [0], [0], [0, 0, 1, 0], [], []>} : vector<8x8xbf16>, vector<8x8xbf16>, vector<8x8xf32> -> vector<8x8xf32>
    %cst_33 = arith.constant 0.353553385 : f32
    %100 = vector.broadcast %cst_33 : f32 to vector<8x8xf32>
    %101 = arith.mulf %99, %100 : vector<8x8xf32>
    %102 = arith.addf %101, %6 : vector<8x8xf32>
    %cst_34 = arith.constant dense<0xFF800000> : vector<8xf32>
    %103 = vector.multi_reduction <maximumf>, %102, %cst_34 [1] : vector<8x8xf32> to vector<8xf32>
    %104 = vector.shape_cast %103 : vector<8xf32> to vector<8x1xf32>
    %105 = vector.broadcast %104 : vector<8x1xf32> to vector<8x8xf32>
    %106 = arith.subf %102, %105 : vector<8x8xf32>
    %107 = math.exp %106 : vector<8x8xf32>
    %cst_35 = arith.constant dense<0.000000e+00> : vector<8xf32>
    %108 = vector.multi_reduction <add>, %107, %cst_35 [1] : vector<8x8xf32> to vector<8xf32>
    %109 = vector.shape_cast %108 : vector<8xf32> to vector<8x1xf32>
    %110 = tpu.reciprocal %109 {approx = true} : vector<8x1xf32> -> vector<8x1xf32>
    %111 = vector.broadcast %110 : vector<8x1xf32> to vector<8x8xf32>
    %112 = arith.mulf %107, %111 : vector<8x8xf32>
    %113 = arith.truncf %112 : vector<8x8xf32> to vector<8x8xbf16>
    %cst_36 = arith.constant dense<0.000000e+00> : vector<8x8xf32>
    %114 = tpu.matmul %113, %98, %cst_36 {dimension_numbers = #tpu.dot_dimension_numbers<[1], [0], [0], [1], [0, 0, 1, 1], [], []>} : vector<8x8xbf16>, vector<8x8xbf16>, vector<8x8xf32> -> vector<8x8xf32>
    %115 = arith.truncf %114 : vector<8x8xf32> to vector<8x8xbf16>
    %116 = vector.extract_strided_slice %10 {offsets = [24, 0], sizes = [8, 32], strides = [1, 1]} : vector<32x32xbf16> to vector<8x32xbf16>
    %cst_37 = arith.constant dense<0.000000e+00> : vector<8x32xf32>
    %117 = tpu.matmul %115, %116, %cst_37 {dimension_numbers = #tpu.dot_dimension_numbers<[1], [0], [0], [1], [0, 0, 1, 1], [], []>} : vector<8x8xbf16>, vector<8x32xbf16>, vector<8x32xf32> -> vector<8x32xf32>
    %118 = arith.addf %92, %117 : vector<8x32xf32>
    %119 = vector.extract_strided_slice %15 {offsets = [8, 0], sizes = [8, 8], strides = [1, 1]} : vector<16x96xf32> to vector<8x8xf32>
    %120 = arith.truncf %119 : vector<8x8xf32> to vector<8x8xbf16>
    %121 = vector.extract_strided_slice %15 {offsets = [8, 32], sizes = [8, 8], strides = [1, 1]} : vector<16x96xf32> to vector<8x8xf32>
    %122 = arith.truncf %121 : vector<8x8xf32> to vector<8x8xbf16>
    %123 = vector.extract_strided_slice %15 {offsets = [8, 64], sizes = [8, 8], strides = [1, 1]} : vector<16x96xf32> to vector<8x8xf32>
    %124 = arith.truncf %123 : vector<8x8xf32> to vector<8x8xbf16>
    %cst_38 = arith.constant dense<0.000000e+00> : vector<8x8xf32>
    %125 = tpu.matmul %120, %122, %cst_38 {dimension_numbers = #tpu.dot_dimension_numbers<[1], [1], [0], [0], [0, 0, 1, 0], [], []>} : vector<8x8xbf16>, vector<8x8xbf16>, vector<8x8xf32> -> vector<8x8xf32>
    %cst_39 = arith.constant 0.353553385 : f32
    %126 = vector.broadcast %cst_39 : f32 to vector<8x8xf32>
    %127 = arith.mulf %125, %126 : vector<8x8xf32>
    %128 = arith.addf %127, %6 : vector<8x8xf32>
    %cst_40 = arith.constant dense<0xFF800000> : vector<8xf32>
    %129 = vector.multi_reduction <maximumf>, %128, %cst_40 [1] : vector<8x8xf32> to vector<8xf32>
    %130 = vector.shape_cast %129 : vector<8xf32> to vector<8x1xf32>
    %131 = vector.broadcast %130 : vector<8x1xf32> to vector<8x8xf32>
    %132 = arith.subf %128, %131 : vector<8x8xf32>
    %133 = math.exp %132 : vector<8x8xf32>
    %cst_41 = arith.constant dense<0.000000e+00> : vector<8xf32>
    %134 = vector.multi_reduction <add>, %133, %cst_41 [1] : vector<8x8xf32> to vector<8xf32>
    %135 = vector.shape_cast %134 : vector<8xf32> to vector<8x1xf32>
    %136 = tpu.reciprocal %135 {approx = true} : vector<8x1xf32> -> vector<8x1xf32>
    %137 = vector.broadcast %136 : vector<8x1xf32> to vector<8x8xf32>
    %138 = arith.mulf %133, %137 : vector<8x8xf32>
    %139 = arith.truncf %138 : vector<8x8xf32> to vector<8x8xbf16>
    %cst_42 = arith.constant dense<0.000000e+00> : vector<8x8xf32>
    %140 = tpu.matmul %139, %124, %cst_42 {dimension_numbers = #tpu.dot_dimension_numbers<[1], [0], [0], [1], [0, 0, 1, 1], [], []>} : vector<8x8xbf16>, vector<8x8xbf16>, vector<8x8xf32> -> vector<8x8xf32>
    %141 = arith.truncf %140 : vector<8x8xf32> to vector<8x8xbf16>
    %142 = vector.extract_strided_slice %10 {offsets = [0, 0], sizes = [8, 32], strides = [1, 1]} : vector<32x32xbf16> to vector<8x32xbf16>
    %cst_43 = arith.constant dense<0.000000e+00> : vector<8x32xf32>
    %143 = tpu.matmul %141, %142, %cst_43 {dimension_numbers = #tpu.dot_dimension_numbers<[1], [0], [0], [1], [0, 0, 1, 1], [], []>} : vector<8x8xbf16>, vector<8x32xbf16>, vector<8x32xf32> -> vector<8x32xf32>
    %144 = vector.extract_strided_slice %15 {offsets = [8, 8], sizes = [8, 8], strides = [1, 1]} : vector<16x96xf32> to vector<8x8xf32>
    %145 = arith.truncf %144 : vector<8x8xf32> to vector<8x8xbf16>
    %146 = vector.extract_strided_slice %15 {offsets = [8, 40], sizes = [8, 8], strides = [1, 1]} : vector<16x96xf32> to vector<8x8xf32>
    %147 = arith.truncf %146 : vector<8x8xf32> to vector<8x8xbf16>
    %148 = vector.extract_strided_slice %15 {offsets = [8, 72], sizes = [8, 8], strides = [1, 1]} : vector<16x96xf32> to vector<8x8xf32>
    %149 = arith.truncf %148 : vector<8x8xf32> to vector<8x8xbf16>
    %cst_44 = arith.constant dense<0.000000e+00> : vector<8x8xf32>
    %150 = tpu.matmul %145, %147, %cst_44 {dimension_numbers = #tpu.dot_dimension_numbers<[1], [1], [0], [0], [0, 0, 1, 0], [], []>} : vector<8x8xbf16>, vector<8x8xbf16>, vector<8x8xf32> -> vector<8x8xf32>
    %cst_45 = arith.constant 0.353553385 : f32
    %151 = vector.broadcast %cst_45 : f32 to vector<8x8xf32>
    %152 = arith.mulf %150, %151 : vector<8x8xf32>
    %153 = arith.addf %152, %6 : vector<8x8xf32>
    %cst_46 = arith.constant dense<0xFF800000> : vector<8xf32>
    %154 = vector.multi_reduction <maximumf>, %153, %cst_46 [1] : vector<8x8xf32> to vector<8xf32>
    %155 = vector.shape_cast %154 : vector<8xf32> to vector<8x1xf32>
    %156 = vector.broadcast %155 : vector<8x1xf32> to vector<8x8xf32>
    %157 = arith.subf %153, %156 : vector<8x8xf32>
    %158 = math.exp %157 : vector<8x8xf32>
    %cst_47 = arith.constant dense<0.000000e+00> : vector<8xf32>
    %159 = vector.multi_reduction <add>, %158, %cst_47 [1] : vector<8x8xf32> to vector<8xf32>
    %160 = vector.shape_cast %159 : vector<8xf32> to vector<8x1xf32>
    %161 = tpu.reciprocal %160 {approx = true} : vector<8x1xf32> -> vector<8x1xf32>
    %162 = vector.broadcast %161 : vector<8x1xf32> to vector<8x8xf32>
    %163 = arith.mulf %158, %162 : vector<8x8xf32>
    %164 = arith.truncf %163 : vector<8x8xf32> to vector<8x8xbf16>
    %cst_48 = arith.constant dense<0.000000e+00> : vector<8x8xf32>
    %165 = tpu.matmul %164, %149, %cst_48 {dimension_numbers = #tpu.dot_dimension_numbers<[1], [0], [0], [1], [0, 0, 1, 1], [], []>} : vector<8x8xbf16>, vector<8x8xbf16>, vector<8x8xf32> -> vector<8x8xf32>
    %166 = arith.truncf %165 : vector<8x8xf32> to vector<8x8xbf16>
    %167 = vector.extract_strided_slice %10 {offsets = [8, 0], sizes = [8, 32], strides = [1, 1]} : vector<32x32xbf16> to vector<8x32xbf16>
    %cst_49 = arith.constant dense<0.000000e+00> : vector<8x32xf32>
    %168 = tpu.matmul %166, %167, %cst_49 {dimension_numbers = #tpu.dot_dimension_numbers<[1], [0], [0], [1], [0, 0, 1, 1], [], []>} : vector<8x8xbf16>, vector<8x32xbf16>, vector<8x32xf32> -> vector<8x32xf32>
    %169 = arith.addf %143, %168 : vector<8x32xf32>
    %170 = vector.extract_strided_slice %15 {offsets = [8, 16], sizes = [8, 8], strides = [1, 1]} : vector<16x96xf32> to vector<8x8xf32>
    %171 = arith.truncf %170 : vector<8x8xf32> to vector<8x8xbf16>
    %172 = vector.extract_strided_slice %15 {offsets = [8, 48], sizes = [8, 8], strides = [1, 1]} : vector<16x96xf32> to vector<8x8xf32>
    %173 = arith.truncf %172 : vector<8x8xf32> to vector<8x8xbf16>
    %174 = vector.extract_strided_slice %15 {offsets = [8, 80], sizes = [8, 8], strides = [1, 1]} : vector<16x96xf32> to vector<8x8xf32>
    %175 = arith.truncf %174 : vector<8x8xf32> to vector<8x8xbf16>
    %cst_50 = arith.constant dense<0.000000e+00> : vector<8x8xf32>
    %176 = tpu.matmul %171, %173, %cst_50 {dimension_numbers = #tpu.dot_dimension_numbers<[1], [1], [0], [0], [0, 0, 1, 0], [], []>} : vector<8x8xbf16>, vector<8x8xbf16>, vector<8x8xf32> -> vector<8x8xf32>
    %cst_51 = arith.constant 0.353553385 : f32
    %177 = vector.broadcast %cst_51 : f32 to vector<8x8xf32>
    %178 = arith.mulf %176, %177 : vector<8x8xf32>
    %179 = arith.addf %178, %6 : vector<8x8xf32>
    %cst_52 = arith.constant dense<0xFF800000> : vector<8xf32>
    %180 = vector.multi_reduction <maximumf>, %179, %cst_52 [1] : vector<8x8xf32> to vector<8xf32>
    %181 = vector.shape_cast %180 : vector<8xf32> to vector<8x1xf32>
    %182 = vector.broadcast %181 : vector<8x1xf32> to vector<8x8xf32>
    %183 = arith.subf %179, %182 : vector<8x8xf32>
    %184 = math.exp %183 : vector<8x8xf32>
    %cst_53 = arith.constant dense<0.000000e+00> : vector<8xf32>
    %185 = vector.multi_reduction <add>, %184, %cst_53 [1] : vector<8x8xf32> to vector<8xf32>
    %186 = vector.shape_cast %185 : vector<8xf32> to vector<8x1xf32>
    %187 = tpu.reciprocal %186 {approx = true} : vector<8x1xf32> -> vector<8x1xf32>
    %188 = vector.broadcast %187 : vector<8x1xf32> to vector<8x8xf32>
    %189 = arith.mulf %184, %188 : vector<8x8xf32>
    %190 = arith.truncf %189 : vector<8x8xf32> to vector<8x8xbf16>
    %cst_54 = arith.constant dense<0.000000e+00> : vector<8x8xf32>
    %191 = tpu.matmul %190, %175, %cst_54 {dimension_numbers = #tpu.dot_dimension_numbers<[1], [0], [0], [1], [0, 0, 1, 1], [], []>} : vector<8x8xbf16>, vector<8x8xbf16>, vector<8x8xf32> -> vector<8x8xf32>
    %192 = arith.truncf %191 : vector<8x8xf32> to vector<8x8xbf16>
    %193 = vector.extract_strided_slice %10 {offsets = [16, 0], sizes = [8, 32], strides = [1, 1]} : vector<32x32xbf16> to vector<8x32xbf16>
    %cst_55 = arith.constant dense<0.000000e+00> : vector<8x32xf32>
    %194 = tpu.matmul %192, %193, %cst_55 {dimension_numbers = #tpu.dot_dimension_numbers<[1], [0], [0], [1], [0, 0, 1, 1], [], []>} : vector<8x8xbf16>, vector<8x32xbf16>, vector<8x32xf32> -> vector<8x32xf32>
    %195 = arith.addf %169, %194 : vector<8x32xf32>
    %196 = vector.extract_strided_slice %15 {offsets = [8, 24], sizes = [8, 8], strides = [1, 1]} : vector<16x96xf32> to vector<8x8xf32>
    %197 = arith.truncf %196 : vector<8x8xf32> to vector<8x8xbf16>
    %198 = vector.extract_strided_slice %15 {offsets = [8, 56], sizes = [8, 8], strides = [1, 1]} : vector<16x96xf32> to vector<8x8xf32>
    %199 = arith.truncf %198 : vector<8x8xf32> to vector<8x8xbf16>
    %200 = vector.extract_strided_slice %15 {offsets = [8, 88], sizes = [8, 8], strides = [1, 1]} : vector<16x96xf32> to vector<8x8xf32>
    %201 = arith.truncf %200 : vector<8x8xf32> to vector<8x8xbf16>
    %cst_56 = arith.constant dense<0.000000e+00> : vector<8x8xf32>
    %202 = tpu.matmul %197, %199, %cst_56 {dimension_numbers = #tpu.dot_dimension_numbers<[1], [1], [0], [0], [0, 0, 1, 0], [], []>} : vector<8x8xbf16>, vector<8x8xbf16>, vector<8x8xf32> -> vector<8x8xf32>
    %cst_57 = arith.constant 0.353553385 : f32
    %203 = vector.broadcast %cst_57 : f32 to vector<8x8xf32>
    %204 = arith.mulf %202, %203 : vector<8x8xf32>
    %205 = arith.addf %204, %6 : vector<8x8xf32>
    %cst_58 = arith.constant dense<0xFF800000> : vector<8xf32>
    %206 = vector.multi_reduction <maximumf>, %205, %cst_58 [1] : vector<8x8xf32> to vector<8xf32>
    %207 = vector.shape_cast %206 : vector<8xf32> to vector<8x1xf32>
    %208 = vector.broadcast %207 : vector<8x1xf32> to vector<8x8xf32>
    %209 = arith.subf %205, %208 : vector<8x8xf32>
    %210 = math.exp %209 : vector<8x8xf32>
    %cst_59 = arith.constant dense<0.000000e+00> : vector<8xf32>
    %211 = vector.multi_reduction <add>, %210, %cst_59 [1] : vector<8x8xf32> to vector<8xf32>
    %212 = vector.shape_cast %211 : vector<8xf32> to vector<8x1xf32>
    %213 = tpu.reciprocal %212 {approx = true} : vector<8x1xf32> -> vector<8x1xf32>
    %214 = vector.broadcast %213 : vector<8x1xf32> to vector<8x8xf32>
    %215 = arith.mulf %210, %214 : vector<8x8xf32>
    %216 = arith.truncf %215 : vector<8x8xf32> to vector<8x8xbf16>
    %cst_60 = arith.constant dense<0.000000e+00> : vector<8x8xf32>
    %217 = tpu.matmul %216, %201, %cst_60 {dimension_numbers = #tpu.dot_dimension_numbers<[1], [0], [0], [1], [0, 0, 1, 1], [], []>} : vector<8x8xbf16>, vector<8x8xbf16>, vector<8x8xf32> -> vector<8x8xf32>
    %218 = arith.truncf %217 : vector<8x8xf32> to vector<8x8xbf16>
    %219 = vector.extract_strided_slice %10 {offsets = [24, 0], sizes = [8, 32], strides = [1, 1]} : vector<32x32xbf16> to vector<8x32xbf16>
    %cst_61 = arith.constant dense<0.000000e+00> : vector<8x32xf32>
    %220 = tpu.matmul %218, %219, %cst_61 {dimension_numbers = #tpu.dot_dimension_numbers<[1], [0], [0], [1], [0, 0, 1, 1], [], []>} : vector<8x8xbf16>, vector<8x32xbf16>, vector<8x32xf32> -> vector<8x32xf32>
    %221 = arith.addf %195, %220 : vector<8x32xf32>
    %222 = tpu.concatenate %118, %221 in 0 : vector<8x32xf32>, vector<8x32xf32> -> vector<16x32xf32>
    %c0_62 = arith.constant 0 : index
    %c0_63 = arith.constant 0 : index
    %c0_64 = arith.constant 0 : index
    %223 = vector.load %arg7[%c0_62, %c0_63, %c0_64] : memref<1x1x32xf32, #tpu.memory_space<vmem>>, vector<1x1x32xf32>
    %224 = vector.shape_cast %223 : vector<1x1x32xf32> to vector<1x32xf32>
    %225 = vector.broadcast %224 : vector<1x32xf32> to vector<16x32xf32>
    %226 = arith.addf %222, %225 : vector<16x32xf32>
    %227 = arith.addf %4, %226 : vector<16x32xf32>
    %c0_65 = arith.constant 0 : index
    %c0_66 = arith.constant 0 : index
    %c0_67 = arith.constant 0 : index
    %228 = vector.load %arg8[%c0_65, %c0_66, %c0_67] : memref<1x1x32xf32, #tpu.memory_space<vmem>>, vector<1x1x32xf32>
    %229 = vector.shape_cast %228 : vector<1x1x32xf32> to vector<1x32xf32>
    %c0_68 = arith.constant 0 : index
    %c0_69 = arith.constant 0 : index
    %c0_70 = arith.constant 0 : index
    %230 = vector.load %arg9[%c0_68, %c0_69, %c0_70] : memref<1x1x32xf32, #tpu.memory_space<vmem>>, vector<1x1x32xf32>
    %231 = vector.shape_cast %230 : vector<1x1x32xf32> to vector<1x32xf32>
    %cst_71 = arith.constant dense<0.000000e+00> : vector<16xf32>
    %232 = vector.multi_reduction <add>, %227, %cst_71 [1] : vector<16x32xf32> to vector<16xf32>
    %233 = vector.shape_cast %232 : vector<16xf32> to vector<16x1xf32>
    %cst_72 = arith.constant 3.200000e+01 : f32
    %234 = vector.broadcast %cst_72 : f32 to vector<16x1xf32>
    %235 = arith.divf %233, %234 : vector<16x1xf32>
    %236 = vector.broadcast %235 : vector<16x1xf32> to vector<16x32xf32>
    %237 = arith.subf %227, %236 : vector<16x32xf32>
    %238 = arith.mulf %237, %237 : vector<16x32xf32>
    %cst_73 = arith.constant dense<0.000000e+00> : vector<16xf32>
    %239 = vector.multi_reduction <add>, %238, %cst_73 [1] : vector<16x32xf32> to vector<16xf32>
    %240 = vector.shape_cast %239 : vector<16xf32> to vector<16x1xf32>
    %cst_74 = arith.constant 3.200000e+01 : f32
    %241 = vector.broadcast %cst_74 : f32 to vector<16x1xf32>
    %242 = arith.divf %240, %241 : vector<16x1xf32>
    %cst_75 = arith.constant 9.99999974E-6 : f32
    %243 = vector.broadcast %cst_75 : f32 to vector<16x1xf32>
    %244 = arith.addf %242, %243 : vector<16x1xf32>
    %245 = math.rsqrt %244 : vector<16x1xf32>
    %246 = vector.broadcast %245 : vector<16x1xf32> to vector<16x32xf32>
    %247 = arith.mulf %237, %246 : vector<16x32xf32>
    %248 = vector.broadcast %229 : vector<1x32xf32> to vector<16x32xf32>
    %249 = arith.mulf %247, %248 : vector<16x32xf32>
    %250 = vector.broadcast %231 : vector<1x32xf32> to vector<16x32xf32>
    %251 = arith.addf %249, %250 : vector<16x32xf32>
    %252 = arith.truncf %251 : vector<16x32xf32> to vector<16x32xbf16>
    %c0_76 = arith.constant 0 : index
    %c0_77 = arith.constant 0 : index
    %c0_78 = arith.constant 0 : index
    %253 = vector.load %arg10[%c0_76, %c0_77, %c0_78] : memref<1x32x64xbf16, #tpu.memory_space<vmem>>, vector<1x32x64xbf16>
    %254 = vector.shape_cast %253 : vector<1x32x64xbf16> to vector<32x64xbf16>
    %cst_79 = arith.constant dense<0.000000e+00> : vector<16x64xf32>
    %255 = tpu.matmul %252, %254, %cst_79 {dimension_numbers = #tpu.dot_dimension_numbers<[1], [0], [0], [1], [0, 0, 1, 1], [], []>} : vector<16x32xbf16>, vector<32x64xbf16>, vector<16x64xf32> -> vector<16x64xf32>
    %c0_80 = arith.constant 0 : index
    %c0_81 = arith.constant 0 : index
    %c0_82 = arith.constant 0 : index
    %256 = vector.load %arg11[%c0_80, %c0_81, %c0_82] : memref<1x1x64xf32, #tpu.memory_space<vmem>>, vector<1x1x64xf32>
    %257 = vector.shape_cast %256 : vector<1x1x64xf32> to vector<1x64xf32>
    %258 = vector.broadcast %257 : vector<1x64xf32> to vector<16x64xf32>
    %259 = arith.addf %255, %258 : vector<16x64xf32>
    %cst_83 = arith.constant 0.000000e+00 : f32
    %260 = vector.broadcast %cst_83 : f32 to vector<16x64xf32>
    %261 = arith.maximumf %259, %260 : vector<16x64xf32>
    %262 = arith.truncf %261 : vector<16x64xf32> to vector<16x64xbf16>
    %c0_84 = arith.constant 0 : index
    %c0_85 = arith.constant 0 : index
    %c0_86 = arith.constant 0 : index
    %263 = vector.load %arg12[%c0_84, %c0_85, %c0_86] : memref<1x64x32xbf16, #tpu.memory_space<vmem>>, vector<1x64x32xbf16>
    %264 = vector.shape_cast %263 : vector<1x64x32xbf16> to vector<64x32xbf16>
    %cst_87 = arith.constant dense<0.000000e+00> : vector<16x32xf32>
    %265 = tpu.matmul %262, %264, %cst_87 {dimension_numbers = #tpu.dot_dimension_numbers<[1], [0], [0], [1], [0, 0, 1, 1], [], []>} : vector<16x64xbf16>, vector<64x32xbf16>, vector<16x32xf32> -> vector<16x32xf32>
    %c0_88 = arith.constant 0 : index
    %c0_89 = arith.constant 0 : index
    %c0_90 = arith.constant 0 : index
    %266 = vector.load %arg13[%c0_88, %c0_89, %c0_90] : memref<1x1x32xf32, #tpu.memory_space<vmem>>, vector<1x1x32xf32>
    %267 = vector.shape_cast %266 : vector<1x1x32xf32> to vector<1x32xf32>
    %268 = vector.broadcast %267 : vector<1x32xf32> to vector<16x32xf32>
    %269 = arith.addf %265, %268 : vector<16x32xf32>
    %270 = arith.addf %251, %269 : vector<16x32xf32>
    %c0_91 = arith.constant 0 : index
    %c0_92 = arith.constant 0 : index
    %c0_93 = arith.constant 0 : index
    %271 = vector.load %arg14[%c0_91, %c0_92, %c0_93] : memref<1x1x32xf32, #tpu.memory_space<vmem>>, vector<1x1x32xf32>
    %272 = vector.shape_cast %271 : vector<1x1x32xf32> to vector<1x32xf32>
    %c0_94 = arith.constant 0 : index
    %c0_95 = arith.constant 0 : index
    %c0_96 = arith.constant 0 : index
    %273 = vector.load %arg15[%c0_94, %c0_95, %c0_96] : memref<1x1x32xf32, #tpu.memory_space<vmem>>, vector<1x1x32xf32>
    %274 = vector.shape_cast %273 : vector<1x1x32xf32> to vector<1x32xf32>
    %cst_97 = arith.constant dense<0.000000e+00> : vector<16xf32>
    %275 = vector.multi_reduction <add>, %270, %cst_97 [1] : vector<16x32xf32> to vector<16xf32>
    %276 = vector.shape_cast %275 : vector<16xf32> to vector<16x1xf32>
    %cst_98 = arith.constant 3.200000e+01 : f32
    %277 = vector.broadcast %cst_98 : f32 to vector<16x1xf32>
    %278 = arith.divf %276, %277 : vector<16x1xf32>
    %279 = vector.broadcast %278 : vector<16x1xf32> to vector<16x32xf32>
    %280 = arith.subf %270, %279 : vector<16x32xf32>
    %281 = arith.mulf %280, %280 : vector<16x32xf32>
    %cst_99 = arith.constant dense<0.000000e+00> : vector<16xf32>
    %282 = vector.multi_reduction <add>, %281, %cst_99 [1] : vector<16x32xf32> to vector<16xf32>
    %283 = vector.shape_cast %282 : vector<16xf32> to vector<16x1xf32>
    %cst_100 = arith.constant 3.200000e+01 : f32
    %284 = vector.broadcast %cst_100 : f32 to vector<16x1xf32>
    %285 = arith.divf %283, %284 : vector<16x1xf32>
    %cst_101 = arith.constant 9.99999974E-6 : f32
    %286 = vector.broadcast %cst_101 : f32 to vector<16x1xf32>
    %287 = arith.addf %285, %286 : vector<16x1xf32>
    %288 = math.rsqrt %287 : vector<16x1xf32>
    %289 = vector.broadcast %288 : vector<16x1xf32> to vector<16x32xf32>
    %290 = arith.mulf %280, %289 : vector<16x32xf32>
    %291 = vector.broadcast %272 : vector<1x32xf32> to vector<16x32xf32>
    %292 = arith.mulf %290, %291 : vector<16x32xf32>
    %293 = vector.broadcast %274 : vector<1x32xf32> to vector<16x32xf32>
    %294 = arith.addf %292, %293 : vector<16x32xf32>
    %295 = vector.shape_cast %294 : vector<16x32xf32> to vector<2x8x32xf32>
    %c0_102 = arith.constant 0 : index
    %c0_103 = arith.constant 0 : index
    %c0_104 = arith.constant 0 : index
    %296 = vector.load %arg16[%c0_102, %c0_103, %c0_104] : memref<2x8x32xf32, #tpu.memory_space<vmem>>, vector<2x8x32xf32>
    tpu.vector_store %arg16[%c0_102, %c0_103, %c0_104], %295 {strides = array<i32>} : memref<2x8x32xf32, #tpu.memory_space<vmem>>, vector<2x8x32xf32>,
    return
  }
  func.func @transform_0(%arg0: i32, %arg1: i32) -> (i32, i32, i32) {
    %c0_i32 = arith.constant 0 : i32
    %c0_i32_0 = arith.constant 0 : i32
    %c0_i32_1 = arith.constant 0 : i32
    return %arg0, %c0_i32, %c0_i32_0 : i32, i32, i32
  }
  func.func @transform_1(%arg0: i32, %arg1: i32) -> (i32, i32) {
    %c0_i32 = arith.constant 0 : i32
    %c0_i32_0 = arith.constant 0 : i32
    %c0_i32_1 = arith.constant 0 : i32
    return %c0_i32, %c0_i32_0 : i32, i32
  }
  func.func @transform_2(%arg0: i32, %arg1: i32) -> (i32, i32, i32) {
    %c0_i32 = arith.constant 0 : i32
    %c0_i32_0 = arith.constant 0 : i32
    %c0_i32_1 = arith.constant 0 : i32
    return %arg1, %c0_i32, %c0_i32_0 : i32, i32, i32
  }
  func.func @transform_3(%arg0: i32, %arg1: i32) -> (i32, i32, i32) {
    %c0_i32 = arith.constant 0 : i32
    %c0_i32_0 = arith.constant 0 : i32
    %c0_i32_1 = arith.constant 0 : i32
    return %arg1, %c0_i32, %c0_i32_0 : i32, i32, i32
  }
  func.func @transform_4(%arg0: i32, %arg1: i32) -> (i32, i32, i32) {
    %c0_i32 = arith.constant 0 : i32
    %c0_i32_0 = arith.constant 0 : i32
    %c0_i32_1 = arith.constant 0 : i32
    return %arg1, %c0_i32, %c0_i32_0 : i32, i32, i32
  }
  func.func @transform_5(%arg0: i32, %arg1: i32) -> (i32, i32, i32) {
    %c0_i32 = arith.constant 0 : i32
    %c0_i32_0 = arith.constant 0 : i32
    %c0_i32_1 = arith.constant 0 : i32
    return %arg1, %c0_i32, %c0_i32_0 : i32, i32, i32
  }
  func.func @transform_6(%arg0: i32, %arg1: i32) -> (i32, i32, i32) {
    %c0_i32 = arith.constant 0 : i32
    %c0_i32_0 = arith.constant 0 : i32
    %c0_i32_1 = arith.constant 0 : i32
    return %arg1, %c0_i32, %c0_i32_0 : i32, i32, i32
  }
  func.func @transform_7(%arg0: i32, %arg1: i32) -> (i32, i32, i32) {
    %c0_i32 = arith.constant 0 : i32
    %c0_i32_0 = arith.constant 0 : i32
    %c0_i32_1 = arith.constant 0 : i32
    return %arg1, %c0_i32, %c0_i32_0 : i32, i32, i32
  }
  func.func @transform_8(%arg0: i32, %arg1: i32) -> (i32, i32, i32) {
    %c0_i32 = arith.constant 0 : i32
    %c0_i32_0 = arith.constant 0 : i32
    %c0_i32_1 = arith.constant 0 : i32
    return %arg1, %c0_i32, %c0_i32_0 : i32, i32, i32
  }
  func.func @transform_9(%arg0: i32, %arg1: i32) -> (i32, i32, i32) {
    %c0_i32 = arith.constant 0 : i32
    %c0_i32_0 = arith.constant 0 : i32
    %c0_i32_1 = arith.constant 0 : i32
    return %arg1, %c0_i32, %c0_i32_0 : i32, i32, i32
  }
  func.func @transform_10(%arg0: i32, %arg1: i32) -> (i32, i32, i32) {
    %c0_i32 = arith.constant 0 : i32
    %c0_i32_0 = arith.constant 0 : i32
    %c0_i32_1 = arith.constant 0 : i32
    return %arg1, %c0_i32, %c0_i32_0 : i32, i32, i32
  }
  func.func @transform_11(%arg0: i32, %arg1: i32) -> (i32, i32, i32) {
    %c0_i32 = arith.constant 0 : i32
    %c0_i32_0 = arith.constant 0 : i32
    %c0_i32_1 = arith.constant 0 : i32
    return %arg1, %c0_i32, %c0_i32_0 : i32, i32, i32
  }
  func.func @transform_12(%arg0: i32, %arg1: i32) -> (i32, i32, i32) {
    %c0_i32 = arith.constant 0 : i32
    %c0_i32_0 = arith.constant 0 : i32
    %c0_i32_1 = arith.constant 0 : i32
    return %arg1, %c0_i32, %c0_i32_0 : i32, i32, i32
  }
  func.func @transform_13(%arg0: i32, %arg1: i32) -> (i32, i32, i32) {
    %c0_i32 = arith.constant 0 : i32
    %c0_i32_0 = arith.constant 0 : i32
    %c0_i32_1 = arith.constant 0 : i32
    return %arg1, %c0_i32, %c0_i32_0 : i32, i32, i32
  }
  func.func @transform_14(%arg0: i32, %arg1: i32) -> (i32, i32, i32) {
    %c0_i32 = arith.constant 0 : i32
    %c0_i32_0 = arith.constant 0 : i32
    %c0_i32_1 = arith.constant 0 : i32
    return %arg0, %c0_i32, %c0_i32_0 : i32, i32, i32
  }
}

</mosaic_0001>

<bundles_post_ra>
// kernel: tpu_custom_call.1
= control target key start
LH: loop header
LB: loop body
LE: loop exit
PB: predicated region body
PF: predicated region fallthrough
CT: control target
= control target key end

     0   :  { %s3567_s0 = inlined_call_operand.hbm [shape: f32[2,8,32], index: 0, kind: input, shape index: {}]   ;;  %s3568_s1 = inlined_call_operand.hbm [shape: f32[8,8], index: 1, kind: input, shape index: {}]   ;;  %s3569_s2 = inlined_call_operand.vmem [shape: bf16[2,32,96], index: 2, kind: input, shape index: {}]   ;;  %s3570_s3 = inlined_call_operand.vmem [shape: f32[2,1,96], index: 3, kind: input, shape index: {}]   ;;  %s3571_s4 = inlined_call_operand.vmem [shape: bf16[2,32,32], index: 4, kind: input, shape index: {}]   ;;  %s3572_s5 = inlined_call_operand.vmem [shape: f32[2,1,32], index: 5, kind: input, shape index: {}]   ;;  %s3573_s6 = inlined_call_operand.vmem [shape: f32[2,1,32], index: 6, kind: input, shape index: {}]   ;;  %s3574_s7 = inlined_call_operand.vmem [shape: f32[2,1,32], index: 7, kind: input, shape index: {}]   ;;  %s3575_s8 = inlined_call_operand.vmem [shape: bf16[2,32,64], index: 8, kind: input, shape index: {}]   ;;  %s3576_s9 = inlined_call_operand.vmem [shape: f32[2,1,64], index: 9, kind: input, shape index: {}]   ;;  %s3577_s10 = inlined_call_operand.vmem [shape: bf16[2,64,32], index: 10, kind: input, shape index: {}]   ;;  %s3578_s11 = inlined_call_operand.vmem [shape: f32[2,1,32], index: 11, kind: input, shape index: {}]   ;;  %s3579_s12 = inlined_call_operand.vmem [shape: f32[2,1,32], index: 12, kind: input, shape index: {}]   ;;  %s3580_s13 = inlined_call_operand.vmem [shape: f32[2,1,32], index: 13, kind: input, shape index: {}]   ;;  %s3581_s14 = inlined_call_operand.hbm [shape: f32[2,8,32], index: 14, kind: output, shape index: {}]  }
   0x1   :  { %3585 = sst [smem:[#allocation14_spill]] %s3567_s0 }
   0x2   :  { %3586 = sst [smem:[#allocation15_spill]] %s3568_s1 }
   0x3   :  { %3587 = sst [smem:[#allocation16_spill]] %s3569_s2 }
   0x4   :  { %3588 = sst [smem:[#allocation17_spill]] %s3571_s4 }
   0x5   :  { %3589 = sst [smem:[#allocation18_spill]] %s3581_s14 }
   0x6   :  { %19 = vsyncpa [#allocation3], 0 }
   0x7   :  { %20 = vsyncpa [#allocation6], 0 }
   0x8   :  { %21 = vsyncpa [#allocation4], 0  ;;  %s3109_s29 = smov 0   ;;  %s3111_s30 = smov 0  }
   0x9   :  { %s3113_s15 = smov 0  }
   0xa LB: > { %3590 = sst [smem:[#allocation11_spill]] %s3008_s30  ;;  %s3582_s16 = sadd.s32 4294967295, %s3012_s15   ;;  %s3012_s15 = sphi %s3113_s15, %s27_s15   ;;  %s3008_s30 = sphi %s3111_s30, %s3610_s30   ;;  %s3004_s29 = sphi %s3109_s29, %s3609_s29  }
   0xb   : > { %3591 = sst [smem:[#allocation12_spill]] %s3012_s15  ;;  %s36_s17 = sadd.s32 1, %s3008_s30 }
   0xc   : > { %p37_p0 = scmp.ge.s32.totalorder %s36_s17, 2  ;;  %p2487_p1 = scmp.ge.s32.totalorder %s3012_s15, 1 }
   0xd   : > { %p429_p2 = scmp.lt.s32.totalorder %s3012_s15, 3  ;;  %p3136_p4 = scmp.eq.s32.totalorder %s3582_s16, 0 }
   0xe   : > { %s3612_s17 = smov (%p37_p0, %s36_s17), 0  ;;  %s3014_s20 = smov [#allocation2]  }
   0xf   : > { %3592 = sst [smem:[#allocation13_spill]] %s3612_s17  ;;  %p3130_p3 = pnand %p2487_p1, %p429_p2 }
  0x10   : > { %s444_s21 = sshll.u32 %s3014_s20, 4  ;;  %s3015_s23 = smov [#allocation5]   ;;  %s445_s21 = int_to_ptr.vmem [resolvable:$true] %s444_s21 }
  0x11   : > { %p2797_p5 = pneg %p3130_p3  ;;  %s458_s24 = sshll.u32 %s3015_s23, 4  ;;  %s459_s24 = int_to_ptr.vmem [resolvable:$true] %s458_s24 }
  0x12   : > { %s2913_s25 = scalar_lea.vmem %s445_s21, 256  ;;  %p2921_p11 = scmp.lt.s32.totalorder %s445_s21, %s445_s21 }
  0x13   : > { %p3144_p6 = pnand %p3136_p4, %p2797_p5  ;;  %p2914_p8 = scmp.ne.s32.totalorder %s445_s21, %s2913_s25 }
  0x14   : > { %p2922_p12 = scmp.lt.s32.totalorder %s2913_s25, %s2913_s25 }
  0x15   : > { %p2904_p7 = pneg %p3144_p6 }
  0x16   : > { %p2923_p13 = por %p2922_p12, %p2921_p11 }
  0x17   : > { %p2916_p9 = pnand %p2914_p8, %p2904_p7 }
  0x19   : > { %p2917_p10 = pneg %p2916_p9 }
  0x1b   : > { %p2924_p0 = pnand %p2923_p13, %p2917_p10 }
  0x1d   : > { %2927 = shalt.err (!%p2924_p0)
}
  0x1e   : > { %s3016_s26 = smov 128   ;;  %s3017_s27 = smov 8  }
  0x1f   : > { %s3596_s0 = sld [smem:[#allocation14_spill]]  ;;  %s2939_s23 = scalar_lea.vmem %s459_s24, 128 }
  0x20   : > { %p2940_p1 = scmp.ne.s32.totalorder %s459_s24, %s2939_s23  ;;  %p2947_p8 = scmp.lt.s32.totalorder %s459_s24, %s459_s24 }
  0x21   : > { %p2948_p9 = scmp.lt.s32.totalorder %s2939_s23, %s2939_s23 }
  0x22   : > { %p2942_p2 = pnand %p2940_p1, %p2904_p7 }
  0x23   : > { %p2949_p11 = por %p2948_p9, %p2947_p8 }
  0x24   : > { %p2943_p5 = pneg %p2942_p2 }
  0x25   : > { %2800 = dma.hbm_to_vmem [thread:$0]  (!%p3144_p6), %s3596_s0, 256, %s445_s21, [#allocation3], %s3016_s26, %s3016_s26, %s3017_s27  }
  0x26   : > { %p2950_p10 = pnand %p2949_p11, %p2943_p5 }
  0x28   : > { %2953 = shalt.err (!%p2950_p10)
}
  0x29   : > { %s3597_s1 = sld [smem:[#allocation15_spill]] }
  0x2b   : > { %551 = sbr.rel (%p3130_p3) target bundleno = 5336 (0x14d8), region = 76 }
  0x2f   : > { %2803 = dma.hbm_to_vmem [thread:$0]  (!%p3144_p6), %s3597_s1, 128, %s459_s24, [#allocation6]  }
  0x30   : > { %2991 = dma.done.wait (%p3136_p4), [#allocation3], 256  }
  0x31   : > { %2993 = vsyncadd (%p3136_p4), [#allocation3], 4294967040 }
  0x32   : > { %2995 = dma.done.wait (%p3136_p4), [#allocation6], 128  }
  0x33   : > { %2997 = vsyncadd (%p3136_p4), [#allocation6], 4294967168  ;;  %p636_p7 = scmp.lt.s32.totalorder %s3004_s29, 1  ;;  %s3598_s2 = sld [smem:[#allocation16_spill]] }
  0x34   : > { %s3599_s4 = sld [smem:[#allocation17_spill]]  ;;  %p2502_p3 = scmp.ne.s32.totalorder %s3004_s29, 0 }
  0x35   : > { %s3178_s16 = scalar_select %p636_p7, %s3004_s29, 1 }
  0x37   : > { %s2550_s18 = sshll.u32 %s3178_s16, 4  ;;  %s673_s15 = scalar_lea.vmem %s3578_s11, %s3178_s16 }
  0x38   : > { %s3208_s26 = scalar_lea.vmem %s3575_s8, %s2550_s18  ;;  %s676_s19 = scalar_lea.vmem %s3579_s12, %s3178_s16 }
  0x39   : > { %s640_s27 = scalar_lea.vmem %s3598_s2, %s2550_s18  ;;  %s665_s2 = scalar_lea.vmem %s3576_s9, %s3178_s16 }
  0x3a   : > { %s3191_s23 = scalar_lea.vmem %s3599_s4, %s2550_s18  ;;  %s2553_s4 = sshll.u32 %s3178_s16, 5 }
  0x3b   : > { %s3218_s1 = scalar_lea.vmem %s3577_s10, %s2553_s4  ;;  %s679_s14 = scalar_lea.vmem %s3580_s13, %s3178_s16 }
  0x3c   : > { %685 = sbr.rel (%p2502_p3) target bundleno = 67 (0x43), region = 88 }
  0x41   : > { %v686_v0 = vld [vmem:[#allocation2] sm:$0xff]  ;;  %vm688_vm0 = vcmask 261120   ;;  %v687_v1 = vld [vmem:[#allocation2 + $0x8] sm:$0xff] }
  0x42   : > { %689 = vst.msk [vmem:[#allocation7] sm:$0xff] %vm688_vm0, %v686_v0  ;;  %690 = vst.msk [vmem:[#allocation7 + $0x8] sm:$0xff] %vm688_vm0, %v687_v1 }
  0x43 PF: > { %v2854_v2 = vld [vmem:[%s640_s27 + $0x8] sm:$0xff]   ;;  %v3018_v3 = vmov 0.0   ;;  %v2855_v4 = vld [vmem:[%s640_s27] sm:$0xff]   ;;  %vm3019_vm1 = vmmov 0   ;;  %vm722_vm2 = vcmask 261120   ;;  %s3600_s27 = scalar_lea.vmem %s3570_s3, %s3178_s16  ;;  %s3020_s22 = smov 120  }
  0x44   : > { %2613 = vmatprep.subr.bf16.mxu1 %v3018_v3  ;;  %2627 = vmatprep.subr.bf16.mxu0 %v3018_v3  ;;  %v2503_v8 = vld [vmem:[%s3600_s27] ss:$0 sm:$0xff]  ;;  %s3021_s28 = smov 96   ;;  %s3022_s20 = smov 88   ;;  %vm771_vm3 = vcmask 64512   ;;  %v3276_v22 = vld [vmem:[#allocation5] sm:$0xff] }
  0x45   : > { %2614 = vmatpush3.bf16.msra.mxu1 %v2854_v2  ;;  %2617 = vmatprep.mubr.msk.bf16.mxu1 %vm3019_vm1, %v3018_v3  ;;  %s3023_s0 = smov 64   ;;  %s3024_s25 = smov 56   ;;  %vm837_vm4 = vcmask 1043456   ;;  %v699_v58 = vld [vmem:[%s3191_s23] sm:$0xf]  ;;  %vm2199_vm5 = vcmask 523264  }
  0x46   : > { %2615 = vmatprep.subr.bf16.mxu1 %v3018_v3  ;;  %2629 = vmatprep.mubr.msk.bf16.mxu0 %vm3019_vm1, %v3018_v3  ;;  %s3025_s30 = smov 112   ;;  %s3026_s17 = smov 80   ;;  %v3304_v59 = vsel %vm837_vm4, %v699_v58, 0  ;;  %v700_v60 = vld [vmem:[%s3191_s23 + $0x4] sm:$0xf] }
  0x47   : > { %v3310_v61 = vsel %vm837_vm4, %v700_v60, 0  ;;  %s3027_s21 = smov 72   ;;  %s3028_s18 = smov 104  }
  0x48   : > { %s3029_s24 = smov 48   ;;  %s3030_s4 = smov 40  }
  0x49   : > { %v3237_v5 = vld [vmem:[#allocation7] sm:$0xff]  ;;  %v3239_v6 = vld [vmem:[#allocation7 + $0x8] sm:$0xff]  ;;  %2616 = vmatpush3.bf16.msra.mxu1 %v2855_v4  ;;  %s3601_s27 = scalar_lea.vmem %s3572_s5, %s3178_s16 }
  0x4a   : > { %v693_v7 = vpack.c.bf16 %v3239_v6, %v3237_v5  ;;  %2621 = vmatprep.subr.bf16.mxu1 %v3018_v3 }
  0x4c   : > { %2618 = vmatmul.mubr.msk.bf16.vlgmr.msra.gmra.mxu1 %vm722_vm2, %v693_v7 }
  0x4d   : > { %2623 = vmatprep.mubr.msk.bf16.mxu1 %vm3019_vm1, %v3018_v3 }
 0x10c   : > { %v760_v9 = vpop.f32.mrf.mxu1 }
 0x10d   : > { %v761_v10 = vadd.f32 %v2503_v8, %v760_v9 }
 0x10e   : > { %v2619_v11 = vpop.f32.mrf.mxu1 }
 0x10f   : > { %v3255_v12 = vpack.c.bf16 %v761_v10, %v761_v10 }
 0x110   : > { %v763_v13 = vpop.f32.mrf.mxu1 }
 0x111   : > { %v3257_v14 = vadd.f32 %v2503_v8, %v763_v13  ;;  %882 = vrot.lane.b32.xlu1 %v3255_v12, %s3020_s22  ;;  %769 = vrot.lane.b32.xlu0 %v3255_v12, %s3021_s28 }
 0x112   : > { %v2620_v15 = vpop.f32.mrf.mxu1 }
 0x115   : > { %884 = vrot.lane.b32.xlu0 %v3255_v12, %s3022_s20 }
 0x183   : > { %v770_v16 = vpop.permute.xlu0 %769  ;;  %v883_v20 = vpop.permute.xlu1 %882 }
 0x184   : > { %v776_v17 = vsel %vm771_vm3, %v770_v16, 0 }
 0x185   : > { %2622 = vmatpush3.bf16.xpose.msra.mxu1 %v776_v17 }
 0x186   : > { %2633 = vmatprep.subr.bf16.mxu1 %v3018_v3 }
 0x187   : > { %v885_v18 = vpop.permute.xlu0 %884 }
 0x188   : > { %v890_v19 = vsel %vm771_vm3, %v885_v18, 0 }
 0x18c   : > { %2624 = vmatmul.mubr.msk.bf16.vlgmr.msra.gmra.mxu1 %vm771_vm3, %v3255_v12 }
 0x18d   : > { %2634 = vmatpush3.bf16.xpose.msra.mxu1 %v890_v19  ;;  %2635 = vmatprep.mubr.msk.bf16.mxu1 %vm3019_vm1, %v3018_v3 }
 0x18e   : > { %2645 = vmatprep.subr.bf16.mxu1 %v3018_v3 }
 0x194   : > { %2636 = vmatmul.mubr.msk.bf16.vlgmr.msra.gmra.mxu1 %vm771_vm3, %v883_v20 }
 0x195   : > { %2647 = vmatprep.mubr.msk.bf16.mxu1 %vm3019_vm1, %v3018_v3  ;;  %2646 = vmatpush3.bf16.msra.mxu1 %v3310_v61 }
 0x196   : > { %2657 = vmatprep.subr.bf16.mxu1 %v3018_v3 }
 0x24c   : > { %v812_v21 = vpop.f32.mrf.mxu1 }
 0x24d   : > { %v818_v23 = vmul.f32 0.35355338, %v812_v21 }
 0x24e   : > { %v2625_v24 = vpop.f32.mrf.mxu1 }
 0x24f   : > { %v819_v25 = vadd.f32 %v818_v23, %v3276_v22 }
 0x250   : > { %v815_v26 = vpop.f32.mrf.mxu1 }
 0x251   : > { %v820_v27 = vsel %vm771_vm3, %v819_v25, -inf }
 0x252   : > { %821 = vmax.xlane.f32.xlu1 %v820_v27  ;;  %v2626_v28 = vpop.f32.mrf.mxu1 }
 0x254   : > { %v926_v29 = vpop.f32.mrf.mxu1 }
 0x255   : > { %v932_v30 = vmul.f32 0.35355338, %v926_v29 }
 0x256   : > { %v2637_v31 = vpop.f32.mrf.mxu1 }
 0x257   : > { %v933_v32 = vadd.f32 %v932_v30, %v3276_v22 }
 0x258   : > { %v929_v33 = vpop.f32.mrf.mxu1 }
 0x259   : > { %v934_v34 = vsel %vm771_vm3, %v933_v32, -inf }
 0x25a   : > { %935 = vmax.xlane.f32.xlu0 %v934_v34  ;;  %v2638_v35 = vpop.f32.mrf.mxu1 }
 0x2db   : > { %v822_v36 = vpop.xlane.xlu1 %821 }
 0x2dc   : > { %v823_v37 = vsub.f32 %v819_v25, %v822_v36 }
 0x2de   : > { %v824_v38 = vmul.f32 1.442695, %v823_v37 }
 0x2e0   : > { %2862 = vpow2.f32 %v824_v38 }
 0x2e3   : > { %v936_v39 = vpop.xlane.xlu0 %935 }
 0x2e4   : > { %v937_v40 = vsub.f32 %v933_v32, %v936_v39 }
 0x2e6   : > { %v938_v41 = vmul.f32 1.442695, %v937_v40 }
 0x2e8   : > { %2864 = vpow2.f32 %v938_v41 }
 0x2ed   : > { %v2863_v42 = vpop.eup %2862 }
 0x2ee   : > { %v826_v43 = vsel %vm771_vm3, %v2863_v42, 0.0 }
 0x2ef   : > { %827 = vadd.xlane.f32.xlu0 %v826_v43 }
 0x2f5   : > { %v2865_v44 = vpop.eup %2864 }
 0x2f6   : > { %v940_v45 = vsel %vm771_vm3, %v2865_v44, 0.0 }
 0x2f7   : > { %941 = vadd.xlane.f32.xlu1 %v940_v45 }
 0x305   : > { %832 = vrot.lane.b32.xlu0 %v3255_v12, %s3023_s0 }
 0x308   : > { %946 = vrot.lane.b32.xlu1 %v3255_v12, %s3024_s25 }
 0x309   : > { %1087 = vrot.lane.b32.xlu0 %v3255_v12, %s3025_s30 }
 0x30c   : > { %1089 = vrot.lane.b32.xlu1 %v3255_v12, %s3026_s17 }
 0x378   : > { %v828_v46 = vpop.xlane.xlu0 %827 }
 0x379   : > { %2866 = vrcp.f32 %v828_v46 }
 0x37c   : > { %v833_v47 = vpop.permute.xlu0 %832 }
 0x37d   : > { %v839_v48 = vsel %vm837_vm4, %v833_v47, 0  ;;  %v701_v47 = vld [vmem:[%s3191_s23 + $0x8] sm:$0xf] }
 0x37e   : > { %2628 = vmatpush3.bf16.msra.mxu0 %v839_v48  ;;  %v3348_v48 = vsel %vm837_vm4, %v701_v47, 0 }
 0x37f   : > { %2639 = vmatprep.subr.bf16.mxu0 %v3018_v3 }
 0x380   : > { %v942_v49 = vpop.xlane.xlu1 %941  ;;  %v1088_v15 = vpop.permute.xlu0 %1087 }
 0x381   : > { %2868 = vrcp.f32 %v942_v49 }
 0x384   : > { %v947_v52 = vpop.permute.xlu1 %946 }
 0x385   : > { %v952_v54 = vsel %vm837_vm4, %v947_v52, 0 }
 0x386   : > { %v2867_v50 = vpop.eup %2866 }
 0x387   : > { %v830_v51 = vmul.f32 %v2867_v50, %v2863_v42 }
 0x388   : > { %v1090_v4 = vpop.permute.xlu1 %1089 }
 0x389   : > { %v831_v53 = vpack.c.bf16 %v830_v51, %v830_v51  ;;  %v1095_v10 = vsel %vm771_vm3, %v1090_v4, 0 }
 0x38b   : > { %2630 = vmatmul.mubr.msk.bf16.vlgmr.msra.gmra.mxu0 %vm771_vm3, %v831_v53 }
 0x38c   : > { %2640 = vmatpush3.bf16.msra.mxu0 %v952_v54  ;;  %2641 = vmatprep.mubr.msk.bf16.mxu0 %vm3019_vm1, %v3018_v3 }
 0x38d   : > { %2651 = vmatprep.subr.bf16.mxu0 %v3018_v3 }
 0x38e   : > { %v2869_v55 = vpop.eup %2868 }
 0x38f   : > { %v944_v56 = vmul.f32 %v2869_v55, %v2865_v44 }
 0x391   : > { %v945_v57 = vpack.c.bf16 %v944_v56, %v944_v56 }
 0x393   : > { %2642 = vmatmul.mubr.msk.bf16.vlgmr.msra.gmra.mxu0 %vm771_vm3, %v945_v57 }
 0x394   : > { %2653 = vmatprep.mubr.msk.bf16.mxu0 %vm3019_vm1, %v3018_v3  ;;  %2652 = vmatpush3.bf16.msra.mxu0 %v3304_v59 }
 0x395   : > { %2663 = vmatprep.subr.bf16.mxu0 %v3018_v3 }
 0x44b   : > { %v875_v62 = vpop.f32.mrf.mxu0 }
 0x44c   : > { %v881_v63 = vpack.c.bf16 %v875_v62, %v875_v62 }
 0x44d   : > { %v2631_v0 = vpop.f32.mrf.mxu0 }
 0x44e   : > { %2654 = vmatmul.mubr.msk.bf16.vlgmr.msra.gmra.mxu0 %vm771_vm3, %v881_v63  ;;  %v3361_v63 = vpack.c.bf16 %v3257_v14, %v3257_v14 }
 0x44f   : > { %v878_v1 = vpop.f32.mrf.mxu0  ;;  %2665 = vmatprep.mubr.msk.bf16.mxu0 %vm3019_vm1, %v3018_v3 }
 0x451   : > { %v2632_v2 = vpop.f32.mrf.mxu0 }
 0x453   : > { %v988_v7 = vpop.f32.mrf.mxu0 }
 0x454   : > { %v994_v8 = vpack.c.bf16 %v988_v7, %v988_v7 }
 0x455   : > { %v2643_v9 = vpop.f32.mrf.mxu0 }
 0x456   : > { %2648 = vmatmul.mubr.msk.bf16.vlgmr.msra.gmra.mxu1 %vm771_vm3, %v994_v8 }
 0x457   : > { %2658 = vmatpush3.bf16.xpose.msra.mxu1 %v1095_v10  ;;  %v991_v11 = vpop.f32.mrf.mxu0  ;;  %2659 = vmatprep.mubr.msk.bf16.mxu1 %vm3019_vm1, %v3018_v3 }
 0x458   : > { %2669 = vmatprep.subr.bf16.mxu1 %v3018_v3 }
 0x459   : > { %v2644_v13 = vpop.f32.mrf.mxu0 }
 0x45e   : > { %2660 = vmatmul.mubr.msk.bf16.vlgmr.msra.gmra.mxu1 %vm771_vm3, %v1088_v15 }
 0x45f   : > { %2671 = vmatprep.mubr.msk.bf16.mxu1 %vm3019_vm1, %v3018_v3  ;;  %2670 = vmatpush3.bf16.msra.mxu1 %v3348_v48 }
 0x460   : > { %2681 = vmatprep.subr.bf16.mxu1 %v3018_v3 }
 0x50e   : > { %v1081_v16 = vpop.f32.mrf.mxu0 }
 0x510   : > { %v2655_v17 = vpop.f32.mrf.mxu0 }
 0x512   : > { %v1084_v18 = vpop.f32.mrf.mxu0 }
 0x514   : > { %v2656_v19 = vpop.f32.mrf.mxu0 }
 0x516   : > { %v1035_v20 = vpop.f32.mrf.mxu1 }
 0x517   : > { %v3325_v21 = vadd.f32 %v1081_v16, %v1035_v20 }
 0x518   : > { %v2649_v23 = vpop.f32.mrf.mxu1 }
 0x51a   : > { %v1038_v24 = vpop.f32.mrf.mxu1 }
 0x51c   : > { %v2650_v25 = vpop.f32.mrf.mxu1 }
 0x51d   : > { %v702_v25 = vld [vmem:[%s3191_s23 + $0xc] sm:$0xf]  ;;  %s3031_s23 = smov [#allocation7]  }
 0x51e   : > { %v1131_v26 = vpop.f32.mrf.mxu1  ;;  %s2301_s29 = sshll.u32 %s3031_s23, 4  ;;  %s2302_s29 = int_to_ptr.vmem [resolvable:$true] %s2301_s29 }
 0x51f   : > { %v1137_v27 = vmul.f32 0.35355338, %v1131_v26  ;;  %v3393_v26 = vsel %vm837_vm4, %v702_v25, 0  ;;  %p2961_p0 = scmp.lt.s32.totalorder %s2302_s29, %s2302_s29 }
 0x520   : > { %v2661_v28 = vpop.f32.mrf.mxu1 }
 0x521   : > { %v1138_v29 = vadd.f32 %v1137_v27, %v3276_v22 }
 0x522   : > { %v1134_v30 = vpop.f32.mrf.mxu1 }
 0x523   : > { %v1139_v31 = vsel %vm771_vm3, %v1138_v29, -inf }
 0x524   : > { %1140 = vmax.xlane.f32.xlu1 %v1139_v31  ;;  %v2662_v32 = vpop.f32.mrf.mxu1 }
 0x535   : > { %1249 = vrot.lane.b32.xlu1 %v3255_v12, %s3027_s21 }
 0x539   : > { %1247 = vrot.lane.b32.xlu1 %v3255_v12, %s3028_s18 }
 0x5ad   : > { %v1141_v33 = vpop.xlane.xlu1 %1140 }
 0x5ae   : > { %v1142_v34 = vsub.f32 %v1138_v29, %v1141_v33 }
 0x5b0   : > { %v1143_v35 = vmul.f32 1.442695, %v1142_v34 }
 0x5b1   : > { %v1250_v43 = vpop.permute.xlu1 %1249 }
 0x5b2   : > { %2870 = vpow2.f32 %v1143_v35  ;;  %v1255_v45 = vsel %vm771_vm3, %v1250_v43, 0 }
 0x5b5   : > { %v1248_v46 = vpop.permute.xlu1 %1247 }
 0x5bf   : > { %v2871_v36 = vpop.eup %2870 }
 0x5c0   : > { %v1145_v37 = vsel %vm771_vm3, %v2871_v36, 0.0 }
 0x5c1   : > { %1146 = vadd.xlane.f32.xlu0 %v1145_v37 }
 0x5d7   : > { %1151 = vrot.lane.b32.xlu0 %v3255_v12, %s3029_s24 }
 0x64a   : > { %v1147_v38 = vpop.xlane.xlu0 %1146 }
 0x64b   : > { %2872 = vrcp.f32 %v1147_v38 }
 0x64e   : > { %v1152_v39 = vpop.permute.xlu0 %1151 }
 0x64f   : > { %v1157_v40 = vsel %vm837_vm4, %v1152_v39, 0 }
 0x650   : > { %2664 = vmatpush3.bf16.msra.mxu0 %v1157_v40 }
 0x651   : > { %2675 = vmatprep.subr.bf16.mxu0 %v3018_v3 }
 0x658   : > { %v2873_v41 = vpop.eup %2872 }
 0x659   : > { %v1149_v42 = vmul.f32 %v2873_v41, %v2871_v36 }
 0x65b   : > { %v1150_v44 = vpack.c.bf16 %v1149_v42, %v1149_v42 }
 0x65d   : > { %2666 = vmatmul.mubr.msk.bf16.vlgmr.msra.gmra.mxu0 %vm771_vm3, %v1150_v44 }
 0x65e   : > { %2676 = vmatpush3.bf16.xpose.msra.mxu0 %v1255_v45  ;;  %2677 = vmatprep.mubr.msk.bf16.mxu0 %vm3019_vm1, %v3018_v3 }
 0x65f   : > { %2687 = vmatprep.subr.bf16.mxu0 %v3018_v3 }
 0x665   : > { %2678 = vmatmul.mubr.msk.bf16.vlgmr.msra.gmra.mxu0 %vm771_vm3, %v1248_v46 }
 0x666   : > { %2689 = vmatprep.mubr.msk.bf16.mxu0 %vm3019_vm1, %v3018_v3  ;;  %2688 = vmatpush3.bf16.msra.mxu0 %v3393_v26 }
 0x667   : > { %2699 = vmatprep.subr.bf16.mxu0 %v3018_v3 }
 0x71d   : > { %v1193_v49 = vpop.f32.mrf.mxu0 }
 0x71e   : > { %v1199_v50 = vpack.c.bf16 %v1193_v49, %v1193_v49 }
 0x71f   : > { %v2667_v51 = vpop.f32.mrf.mxu0 }
 0x720   : > { %2672 = vmatmul.mubr.msk.bf16.vlgmr.msra.gmra.mxu1 %vm771_vm3, %v1199_v50 }
 0x721   : > { %v1196_v52 = vpop.f32.mrf.mxu0  ;;  %2683 = vmatprep.mubr.msk.bf16.mxu1 %vm3019_vm1, %v3018_v3 }
 0x723   : > { %v2668_v53 = vpop.f32.mrf.mxu0 }
 0x725   : > { %v1291_v54 = vpop.f32.mrf.mxu0 }
 0x726   : > { %v1297_v55 = vmul.f32 0.35355338, %v1291_v54 }
 0x727   : > { %v2679_v56 = vpop.f32.mrf.mxu0 }
 0x728   : > { %v1298_v57 = vadd.f32 %v1297_v55, %v3276_v22 }
 0x729   : > { %v1294_v58 = vpop.f32.mrf.mxu0 }
 0x72a   : > { %v1299_v60 = vsel %vm771_vm3, %v1298_v57, -inf }
 0x72b   : > { %1300 = vmax.xlane.f32.xlu0 %v1299_v60  ;;  %v2680_v62 = vpop.f32.mrf.mxu0 }
 0x741   : > { %1311 = vrot.lane.b32.xlu0 %v3255_v12, %s3030_s4 }
 0x745   : > { %1522 = vrot.lane.b32.xlu0 %v3361_v63, %s3022_s20 }
 0x7b4   : > { %v1301_v0 = vpop.xlane.xlu0 %1300 }
 0x7b5   : > { %v1302_v1 = vsub.f32 %v1298_v57, %v1301_v0 }
 0x7b7   : > { %v1303_v2 = vmul.f32 1.442695, %v1302_v1 }
 0x7b8   : > { %v1312_v4 = vpop.permute.xlu0 %1311 }
 0x7b9   : > { %2874 = vpow2.f32 %v1303_v2  ;;  %v1317_v7 = vsel %vm837_vm4, %v1312_v4, 0 }
 0x7ba   : > { %2682 = vmatpush3.bf16.msra.mxu1 %v1317_v7 }
 0x7bb   : > { %2693 = vmatprep.subr.bf16.mxu1 %v3018_v3 }
 0x7c6   : > { %v2875_v8 = vpop.eup %2874 }
 0x7c7   : > { %v1305_v12 = vsel %vm771_vm3, %v2875_v8, 0.0 }
 0x7c8   : > { %1306 = vadd.xlane.f32.xlu1 %v1305_v12 }
 0x7d9   : > { %1409 = vrot.lane.b32.xlu1 %v3361_v63, %s3021_s28  ;;  %s3602_s28 = scalar_lea.vmem %s3573_s6, %s3178_s16 }
 0x7dd   : > { %1520 = vrot.lane.b32.xlu1 %v3361_v63, %s3020_s22 }
 0x7e0   : > { %v1240_v14 = vpop.f32.mrf.mxu1 }
 0x7e1   : > { %v3373_v9 = vadd.f32 %v1240_v14, %v3325_v21  ;;  %v1523_v21 = vpop.permute.xlu0 %1522 }
 0x7e2   : > { %v2673_v10 = vpop.f32.mrf.mxu1  ;;  %v1528_v23 = vsel %vm771_vm3, %v1523_v21, 0 }
 0x7e4   : > { %v1243_v11 = vpop.f32.mrf.mxu1 }
 0x7e6   : > { %v2674_v13 = vpop.f32.mrf.mxu1 }
 0x851   : > { %v1307_v15 = vpop.xlane.xlu1 %1306 }
 0x852   : > { %2876 = vrcp.f32 %v1307_v15 }
 0x855   : > { %v1410_v18 = vpop.permute.xlu1 %1409 }
 0x856   : > { %v1415_v20 = vsel %vm771_vm3, %v1410_v18, 0 }
 0x859   : > { %v1521_v24 = vpop.permute.xlu1 %1520 }
 0x85f   : > { %v2877_v16 = vpop.eup %2876 }
 0x860   : > { %v1309_v17 = vmul.f32 %v2877_v16, %v2875_v8 }
 0x862   : > { %v1310_v19 = vpack.c.bf16 %v1309_v17, %v1309_v17 }
 0x864   : > { %2684 = vmatmul.mubr.msk.bf16.vlgmr.msra.gmra.mxu1 %vm771_vm3, %v1310_v19 }
 0x865   : > { %2694 = vmatpush3.bf16.xpose.msra.mxu1 %v1415_v20  ;;  %2695 = vmatprep.mubr.msk.bf16.mxu1 %vm3019_vm1, %v3018_v3 }
 0x866   : > { %2705 = vmatprep.subr.bf16.mxu1 %v3018_v3 }
 0x86c   : > { %2696 = vmatmul.mubr.msk.bf16.vlgmr.msra.gmra.mxu1 %vm771_vm3, %v3361_v63 }
 0x86d   : > { %2706 = vmatpush3.bf16.xpose.msra.mxu1 %v1528_v23  ;;  %2707 = vmatprep.mubr.msk.bf16.mxu1 %vm3019_vm1, %v3018_v3 }
 0x86e   : > { %2717 = vmatprep.subr.bf16.mxu1 %v3018_v3 }
 0x874   : > { %2708 = vmatmul.mubr.msk.bf16.vlgmr.msra.gmra.mxu1 %vm771_vm3, %v1521_v24 }
 0x875   : > { %2718 = vmatpush3.bf16.msra.mxu1 %v3310_v61  ;;  %2719 = vmatprep.mubr.msk.bf16.mxu1 %vm3019_vm1, %v3018_v3 }
 0x876   : > { %2729 = vmatprep.subr.bf16.mxu1 %v3018_v3 }
 0x924   : > { %v1353_v27 = vpop.f32.mrf.mxu1 }
 0x925   : > { %v1359_v28 = vpack.c.bf16 %v1353_v27, %v1353_v27 }
 0x926   : > { %v2685_v29 = vpop.f32.mrf.mxu1 }
 0x927   : > { %2690 = vmatmul.mubr.msk.bf16.vlgmr.msra.gmra.mxu0 %vm771_vm3, %v1359_v28 }
 0x928   : > { %v1356_v30 = vpop.f32.mrf.mxu1  ;;  %2701 = vmatprep.mubr.msk.bf16.mxu0 %vm3019_vm1, %v3018_v3 }
 0x92a   : > { %v2686_v61 = vpop.f32.mrf.mxu1 }
 0x92c   : > { %v1451_v31 = vpop.f32.mrf.mxu1 }
 0x92d   : > { %v1457_v32 = vmul.f32 0.35355338, %v1451_v31 }
 0x92e   : > { %v2697_v33 = vpop.f32.mrf.mxu1 }
 0x92f   : > { %v1458_v34 = vadd.f32 %v1457_v32, %v3276_v22 }
 0x930   : > { %v1454_v35 = vpop.f32.mrf.mxu1 }
 0x931   : > { %v1459_v36 = vsel %vm771_vm3, %v1458_v34, -inf }
 0x932   : > { %1460 = vmax.xlane.f32.xlu0 %v1459_v36  ;;  %v2698_v37 = vpop.f32.mrf.mxu1 }
 0x934   : > { %v1564_v38 = vpop.f32.mrf.mxu1 }
 0x935   : > { %v1570_v39 = vmul.f32 0.35355338, %v1564_v38 }
 0x936   : > { %v2709_v40 = vpop.f32.mrf.mxu1 }
 0x937   : > { %v1571_v41 = vadd.f32 %v1570_v39, %v3276_v22 }
 0x938   : > { %v1567_v42 = vpop.f32.mrf.mxu1 }
 0x939   : > { %v1572_v43 = vsel %vm771_vm3, %v1571_v41, -inf }
 0x93a   : > { %1573 = vmax.xlane.f32.xlu1 %v1572_v43  ;;  %v2710_v44 = vpop.f32.mrf.mxu1 }
 0x94b   : > { %1471 = vrot.lane.b32.xlu1 %v3361_v63, %s3023_s0 }
 0x94f   : > { %1721 = vrot.lane.b32.xlu1 %v3361_v63, %s3026_s17 }
 0x953   : > { %1719 = vrot.lane.b32.xlu1 %v3361_v63, %s3025_s30 }
 0x9bb   : > { %v1461_v45 = vpop.xlane.xlu0 %1460 }
 0x9bc   : > { %v1462_v46 = vsub.f32 %v1458_v34, %v1461_v45 }
 0x9be   : > { %v1463_v47 = vmul.f32 1.442695, %v1462_v46 }
 0x9c0   : > { %2878 = vpow2.f32 %v1463_v47 }
 0x9c3   : > { %v1574_v49 = vpop.xlane.xlu1 %1573 }
 0x9c4   : > { %v1575_v50 = vsub.f32 %v1571_v41, %v1574_v49 }
 0x9c6   : > { %v1576_v51 = vmul.f32 1.442695, %v1575_v50 }
 0x9c7   : > { %v1472_v52 = vpop.permute.xlu1 %1471 }
 0x9c8   : > { %2880 = vpow2.f32 %v1576_v51  ;;  %v1477_v53 = vsel %vm837_vm4, %v1472_v52, 0 }
 0x9c9   : > { %2700 = vmatpush3.bf16.msra.mxu0 %v1477_v53 }
 0x9ca   : > { %2711 = vmatprep.subr.bf16.mxu0 %v3018_v3 }
 0x9cb   : > { %v1722_v20 = vpop.permute.xlu1 %1721 }
 0x9cd   : > { %v2879_v54 = vpop.eup %2878 }
 0x9ce   : > { %v1465_v55 = vsel %vm771_vm3, %v2879_v54, 0.0 }
 0x9cf   : > { %1466 = vadd.xlane.f32.xlu0 %v1465_v55  ;;  %v1720_v28 = vpop.permute.xlu1 %1719 }
 0x9d5   : > { %v2881_v56 = vpop.eup %2880 }
 0x9d6   : > { %v1578_v57 = vsel %vm771_vm3, %v2881_v56, 0.0 }
 0x9d7   : > { %1579 = vadd.xlane.f32.xlu0 %v1578_v57 }
 0x9e7   : > { %v1400_v58 = vpop.f32.mrf.mxu0 }
 0x9e8   : > { %v3415_v60 = vadd.f32 %v1400_v58, %v3373_v9 }
 0x9e9   : > { %v2691_v62 = vpop.f32.mrf.mxu0 }
 0x9eb   : > { %v1403_v0 = vpop.f32.mrf.mxu0 }
 0x9ed   : > { %v2692_v1 = vpop.f32.mrf.mxu0  ;;  %1584 = vrot.lane.b32.xlu0 %v3361_v63, %s3024_s25  ;;  %s3603_s25 = scalar_lea.vmem %s3574_s7, %s3178_s16 }
 0xa58   : > { %v1467_v2 = vpop.xlane.xlu0 %1466 }
 0xa59   : > { %2882 = vrcp.f32 %v1467_v2  ;;  %v2531_v2 = vld [vmem:[%s3601_s27] ss:$0 sm:$0xff] }
 0xa60   : > { %v1580_v4 = vpop.xlane.xlu0 %1579 }
 0xa61   : > { %2884 = vrcp.f32 %v1580_v4 }
 0xa64   : > { %v1585_v12 = vpop.permute.xlu0 %1584 }
 0xa65   : > { %v1590_v10 = vsel %vm837_vm4, %v1585_v12, 0 }
 0xa66   : > { %v2883_v7 = vpop.eup %2882 }
 0xa67   : > { %v1469_v8 = vmul.f32 %v2883_v7, %v2879_v54  ;;  %v2040_v7 = vadd.f32 %v2531_v2, %v3415_v60 }
 0xa69   : > { %v1470_v14 = vpack.c.bf16 %v1469_v8, %v1469_v8 }
 0xa6b   : > { %2702 = vmatmul.mubr.msk.bf16.vlgmr.msra.gmra.mxu0 %vm771_vm3, %v1470_v14 }
 0xa6c   : > { %2712 = vmatpush3.bf16.msra.mxu0 %v1590_v10  ;;  %2713 = vmatprep.mubr.msk.bf16.mxu0 %vm3019_vm1, %v3018_v3 }
 0xa6d   : > { %2723 = vmatprep.subr.bf16.mxu0 %v3018_v3 }
 0xa6e   : > { %v2885_v9 = vpop.eup %2884 }
 0xa6f   : > { %v1582_v11 = vmul.f32 %v2885_v9, %v2881_v56 }
 0xa71   : > { %v1583_v13 = vpack.c.bf16 %v1582_v11, %v1582_v11  ;;  %v2042_v11 = vadd.f32 %v2040_v7, %v3237_v5  ;;  %v2533_v7 = vld [vmem:[%s3603_s25] ss:$0 sm:$0xff] }
 0xa73   : > { %2714 = vmatmul.mubr.msk.bf16.vlgmr.msra.gmra.mxu0 %vm771_vm3, %v1583_v13 }
 0xa74   : > { %2724 = vmatpush3.bf16.msra.mxu0 %v3304_v59  ;;  %2725 = vmatprep.mubr.msk.bf16.mxu0 %vm3019_vm1, %v3018_v3  ;;  %v1727_v59 = vsel %vm771_vm3, %v1722_v20, 0 }
 0xa75   : > { %2735 = vmatprep.subr.bf16.mxu0 %v3018_v3 }
 0xb2b   : > { %v1513_v15 = vpop.f32.mrf.mxu0 }
 0xb2c   : > { %v1519_v16 = vpack.c.bf16 %v1513_v15, %v1513_v15  ;;  %v2046_v15 = vsel %vm722_vm2, %v2042_v11, 0.0 }
 0xb2d   : > { %v2703_v17 = vpop.f32.mrf.mxu0 }
 0xb2e   : > { %2726 = vmatmul.mubr.msk.bf16.vlgmr.msra.gmra.mxu0 %vm771_vm3, %v1519_v16 }
 0xb2f   : > { %v1516_v18 = vpop.f32.mrf.mxu0  ;;  %2737 = vmatprep.mubr.msk.bf16.mxu0 %vm3019_vm1, %v3018_v3 }
 0xb31   : > { %v2704_v19 = vpop.f32.mrf.mxu0 }
 0xb33   : > { %v1626_v21 = vpop.f32.mrf.mxu0 }
 0xb34   : > { %v1632_v23 = vpack.c.bf16 %v1626_v21, %v1626_v21 }
 0xb35   : > { %v2715_v24 = vpop.f32.mrf.mxu0 }
 0xb36   : > { %2720 = vmatmul.mubr.msk.bf16.vlgmr.msra.gmra.mxu1 %vm771_vm3, %v1632_v23 }
 0xb37   : > { %2730 = vmatpush3.bf16.xpose.msra.mxu1 %v1727_v59  ;;  %v1629_v25 = vpop.f32.mrf.mxu0  ;;  %2731 = vmatprep.mubr.msk.bf16.mxu1 %vm3019_vm1, %v3018_v3 }
 0xb38   : > { %2741 = vmatprep.subr.bf16.mxu1 %v3018_v3 }
 0xb39   : > { %v2716_v27 = vpop.f32.mrf.mxu0 }
 0xb3e   : > { %2732 = vmatmul.mubr.msk.bf16.vlgmr.msra.gmra.mxu1 %vm771_vm3, %v1720_v28 }
 0xb3f   : > { %2742 = vmatpush3.bf16.msra.mxu1 %v3348_v48  ;;  %2743 = vmatprep.mubr.msk.bf16.mxu1 %vm3019_vm1, %v3018_v3 }
 0xb40   : > { %2753 = vmatprep.subr.bf16.mxu1 %v3018_v3 }
 0xbee   : > { %v1713_v29 = vpop.f32.mrf.mxu0 }
 0xbf0   : > { %v2727_v30 = vpop.f32.mrf.mxu0 }
 0xbf2   : > { %v1716_v61 = vpop.f32.mrf.mxu0 }
 0xbf4   : > { %v2728_v31 = vpop.f32.mrf.mxu0 }
 0xbf6   : > { %v1670_v32 = vpop.f32.mrf.mxu1 }
 0xbf7   : > { %v3442_v33 = vadd.f32 %v1713_v29, %v1670_v32 }
 0xbf8   : > { %v2721_v34 = vpop.f32.mrf.mxu1 }
 0xbfa   : > { %v1673_v35 = vpop.f32.mrf.mxu1 }
 0xbfc   : > { %v2722_v36 = vpop.f32.mrf.mxu1 }
 0xbfe   : > { %v1763_v37 = vpop.f32.mrf.mxu1 }
 0xbff   : > { %v1769_v38 = vmul.f32 0.35355338, %v1763_v37 }
 0xc00   : > { %v2733_v39 = vpop.f32.mrf.mxu1 }
 0xc01   : > { %v1770_v48 = vadd.f32 %v1769_v38, %v3276_v22 }
 0xc02   : > { %v1766_v40 = vpop.f32.mrf.mxu1 }
 0xc03   : > { %v1771_v41 = vsel %vm771_vm3, %v1770_v48, -inf }
 0xc04   : > { %1772 = vmax.xlane.f32.xlu0 %v1771_v41  ;;  %v2734_v42 = vpop.f32.mrf.mxu1 }
 0xc1a   : > { %1783 = vrot.lane.b32.xlu0 %v3361_v63, %s3029_s24 }
 0xc1e   : > { %1876 = vrot.lane.b32.xlu0 %v3361_v63, %s3028_s18 }
 0xc8d   : > { %v1773_v43 = vpop.xlane.xlu0 %1772 }
 0xc8e   : > { %v1774_v44 = vsub.f32 %v1770_v48, %v1773_v43 }
 0xc90   : > { %v1775_v45 = vmul.f32 1.442695, %v1774_v44 }
 0xc91   : > { %v1784_v46 = vpop.permute.xlu0 %1783 }
 0xc92   : > { %2886 = vpow2.f32 %v1775_v45  ;;  %v1789_v47 = vsel %vm837_vm4, %v1784_v46, 0 }
 0xc93   : > { %2736 = vmatpush3.bf16.msra.mxu0 %v1789_v47 }
 0xc94   : > { %2747 = vmatprep.subr.bf16.mxu0 %v3018_v3 }
 0xc95   : > { %v1877_v57 = vpop.permute.xlu0 %1876 }
 0xc9f   : > { %v2887_v49 = vpop.eup %2886 }
 0xca0   : > { %v1777_v50 = vsel %vm771_vm3, %v2887_v49, 0.0 }
 0xca1   : > { %1778 = vadd.xlane.f32.xlu1 %v1777_v50 }
 0xcb2   : > { %1878 = vrot.lane.b32.xlu1 %v3361_v63, %s3027_s21 }
 0xd2a   : > { %v1779_v51 = vpop.xlane.xlu1 %1778 }
 0xd2b   : > { %2888 = vrcp.f32 %v1779_v51  ;;  %v2856_v51 = vld [vmem:[%s3208_s26 + $0x8] sm:$0xff]  }
 0xd2e   : > { %v1879_v54 = vpop.permute.xlu1 %1878 }
 0xd2f   : > { %v1884_v56 = vsel %vm771_vm3, %v1879_v54, 0 }
 0xd38   : > { %v2889_v52 = vpop.eup %2888 }
 0xd39   : > { %v1781_v53 = vmul.f32 %v2889_v52, %v2887_v49  ;;  %v2857_v52 = vld [vmem:[%s3208_s26] sm:$0xff]  }
 0xd3b   : > { %v1782_v55 = vpack.c.bf16 %v1781_v53, %v1781_v53 }
 0xd3d   : > { %2738 = vmatmul.mubr.msk.bf16.vlgmr.msra.gmra.mxu0 %vm771_vm3, %v1782_v55 }
 0xd3e   : > { %2748 = vmatpush3.bf16.xpose.msra.mxu0 %v1884_v56  ;;  %2749 = vmatprep.mubr.msk.bf16.mxu0 %vm3019_vm1, %v3018_v3 }
 0xd3f   : > { %2759 = vmatprep.subr.bf16.mxu0 %v3018_v3 }
 0xd45   : > { %2750 = vmatmul.mubr.msk.bf16.vlgmr.msra.gmra.mxu0 %vm771_vm3, %v1877_v57 }
 0xd46   : > { %2760 = vmatpush3.bf16.msra.mxu0 %v3393_v26  ;;  %2761 = vmatprep.mubr.msk.bf16.mxu0 %vm3019_vm1, %v3018_v3 }
 0xd47   : > { %2773 = vmatprep.subr.bf16.mxu0 %v3018_v3 }
 0xdfd   : > { %v1825_v58 = vpop.f32.mrf.mxu0 }
 0xdfe   : > { %v1831_v62 = vpack.c.bf16 %v1825_v58, %v1825_v58 }
 0xdff   : > { %v2739_v0 = vpop.f32.mrf.mxu0 }
 0xe00   : > { %2744 = vmatmul.mubr.msk.bf16.vlgmr.msra.gmra.mxu1 %vm771_vm3, %v1831_v62 }
 0xe01   : > { %v1828_v1 = vpop.f32.mrf.mxu0  ;;  %2755 = vmatprep.mubr.msk.bf16.mxu1 %vm3019_vm1, %v3018_v3 }
 0xe02   : > { %v2532_v1 = vld [vmem:[%s3602_s28] ss:$0 sm:$0xff] }
 0xe03   : > { %v2740_v26 = vpop.f32.mrf.mxu0 }
 0xe05   : > { %v1920_v4 = vpop.f32.mrf.mxu0 }
 0xe06   : > { %v1926_v8 = vmul.f32 0.35355338, %v1920_v4 }
 0xe07   : > { %v2751_v12 = vpop.f32.mrf.mxu0 }
 0xe08   : > { %v1927_v14 = vadd.f32 %v1926_v8, %v3276_v22 }
 0xe09   : > { %v1923_v10 = vpop.f32.mrf.mxu0 }
 0xe0a   : > { %v1928_v9 = vsel %vm771_vm3, %v1927_v14, -inf }
 0xe0b   : > { %1929 = vmax.xlane.f32.xlu1 %v1928_v9  ;;  %v2752_v13 = vpop.f32.mrf.mxu0  ;;  %v2859_v9 = vld [vmem:[%s3218_s1 + $0x10] sm:$0xff]  }
 0xe0c   : > { %v2861_v13 = vld [vmem:[%s3218_s1] sm:$0xff]  }
 0xe0f   : > { %2047 = vadd.xlane.f32.xlu1 %v2046_v15  ;;  %v2534_v15 = vld [vmem:[%s665_s2] ss:$0 sm:$0xff] }
 0xe94   : > { %v1930_v16 = vpop.xlane.xlu1 %1929 }
 0xe95   : > { %v1931_v17 = vsub.f32 %v1927_v14, %v1930_v16 }
 0xe97   : > { %v1932_v18 = vmul.f32 1.442695, %v1931_v17 }
 0xe99   : > { %2890 = vpow2.f32 %v1932_v18 }
 0xea6   : > { %v2891_v19 = vpop.eup %2890 }
 0xea7   : > { %v1934_v60 = vsel %vm771_vm3, %v2891_v19, 0.0 }
 0xea8   : > { %1935 = vadd.xlane.f32.xlu0 %v1934_v60 }
 0xebe   : > { %1940 = vrot.lane.b32.xlu0 %v3361_v63, %s3030_s4 }
 0xec0   : > { %v1869_v22 = vpop.f32.mrf.mxu1 }
 0xec1   : > { %v1875_v20 = vadd.f32 %v1869_v22, %v3442_v33  ;;  %v2048_v33 = vpop.xlane.xlu1 %2047 }
 0xec2   : > { %v2745_v5 = vpop.f32.mrf.mxu1  ;;  %v2053_v34 = vmul.f32 0.03125, %v2048_v33 }
 0xec4   : > { %v1872_v21 = vpop.f32.mrf.mxu1  ;;  %v2055_v38 = vsub.f32 %v2042_v11, %v2053_v34  ;;  %v2860_v11 = vld [vmem:[%s3218_s1 + $0x8] sm:$0xff]  }
 0xec6   : > { %v2746_v23 = vpop.f32.mrf.mxu1  ;;  %v2057_v43 = vmul.f32 %v2055_v38, %v2055_v38 }
 0xec8   : > { %v2059_v44 = vsel %vm722_vm2, %v2057_v43, 0.0 }
 0xf31   : > { %v1936_v24 = vpop.xlane.xlu0 %1935 }
 0xf32   : > { %2892 = vrcp.f32 %v1936_v24 }
 0xf35   : > { %v1941_v59 = vpop.permute.xlu0 %1940 }
 0xf36   : > { %v1946_v25 = vsel %vm837_vm4, %v1941_v59, 0 }
 0xf37   : > { %2754 = vmatpush3.bf16.msra.mxu1 %v1946_v25 }
 0xf38   : > { %2765 = vmatprep.subr.bf16.mxu1 %v3018_v3 }
 0xf3f   : > { %v2893_v27 = vpop.eup %2892 }
 0xf40   : > { %v1938_v28 = vmul.f32 %v2893_v27, %v2891_v19 }
 0xf42   : > { %v1939_v29 = vpack.c.bf16 %v1938_v28, %v1938_v28 }
 0xf44   : > { %2756 = vmatmul.mubr.msk.bf16.vlgmr.msra.gmra.mxu1 %vm771_vm3, %v1939_v29 }
 0xf45   : > { %2769 = vmatprep.mubr.msk.bf16.mxu1 %vm3019_vm1, %v3018_v3  ;;  %2766 = vmatpush3.bf16.msra.mxu1 %v2856_v51 }
 0xf46   : > { %2767 = vmatprep.subr.bf16.mxu1 %v3018_v3 }
 0xf49   : > { %2768 = vmatpush3.bf16.msra.mxu1 %v2857_v52 }
0x1004   : > { %v1982_v63 = vpop.f32.mrf.mxu1 }
0x1005   : > { %v1988_v30 = vpack.c.bf16 %v1982_v63, %v1982_v63 }
0x1006   : > { %v2757_v61 = vpop.f32.mrf.mxu1 }
0x1007   : > { %2762 = vmatmul.mubr.msk.bf16.vlgmr.msra.gmra.mxu0 %vm771_vm3, %v1988_v30 }
0x1008   : > { %v1985_v31 = vpop.f32.mrf.mxu1  ;;  %2781 = vmatprep.mubr.msk.bf16.mxu0 %vm3019_vm1, %v3018_v3 }
0x100a   : > { %v2758_v32 = vpop.f32.mrf.mxu1 }
0x10c7   : > { %v2026_v35 = vpop.f32.mrf.mxu0 }
0x10c8   : > { %v2032_v36 = vadd.f32 %v2026_v35, %v1875_v20 }
0x10c9   : > { %v2763_v37 = vpop.f32.mrf.mxu0 }
0x10ca   : > { %v2041_v39 = vadd.f32 %v2531_v2, %v2032_v36 }
0x10cb   : > { %v2029_v48 = vpop.f32.mrf.mxu0 }
0x10cc   : > { %v2043_v40 = vadd.f32 %v2041_v39, %v3239_v6  ;;  %v2858_v6 = vld [vmem:[%s3218_s1 + $0x18] sm:$0xff]   ;;  %s3604_s1 = sld [smem:[#allocation12_spill]] }
0x10cd   : > { %v2764_v41 = vpop.f32.mrf.mxu0  ;;  %2774 = vmatpush3.bf16.msra.mxu0 %v2858_v6 }
0x10ce   : > { %v2049_v42 = vsel %vm722_vm2, %v2043_v40, 0.0  ;;  %2775 = vmatprep.subr.bf16.mxu0 %v3018_v3 }
0x10cf   : > { %2050 = vadd.xlane.f32.xlu1 %v2049_v42 }
0x10d1   : > { %2776 = vmatpush3.bf16.msra.mxu0 %v2859_v9 }
0x10d2   : > { %2777 = vmatprep.subr.bf16.mxu0 %v3018_v3  ;;  %s3605_s27 = sadd.s32 4294967295, %s3604_s1  }
0x10d3   : > { %2060 = vadd.xlane.f32.xlu1 %v2059_v44  ;;  %p3542_p4 = scmp.eq.s32.totalorder %s3605_s27, 1 }
0x10d5   : > { %2778 = vmatpush3.bf16.msra.mxu0 %v2860_v11 }
0x10d6   : > { %2779 = vmatprep.subr.bf16.mxu0 %v3018_v3  ;;  %v2538_v3 = vld [vmem:[%s673_s15] ss:$0 sm:$0xff] }
0x10d9   : > { %2780 = vmatpush3.bf16.msra.mxu0 %v2861_v13 }
0x1158   : > { %v2051_v45 = vpop.xlane.xlu1 %2050 }
0x1159   : > { %v2054_v46 = vmul.f32 0.03125, %v2051_v45 }
0x115b   : > { %v2056_v47 = vsub.f32 %v2043_v40, %v2054_v46 }
0x115c   : > { %v2061_v53 = vpop.xlane.xlu1 %2060 }
0x115d   : > { %v2058_v49 = vmul.f32 %v2056_v47, %v2056_v47  ;;  %v2065_v54 = vmul.f32 0.03125, %v2061_v53 }
0x115f   : > { %v2062_v50 = vsel %vm722_vm2, %v2058_v49, 0.0  ;;  %v2067_v55 = vadd.f32 1e-05, %v2065_v54 }
0x1160   : > { %2063 = vadd.xlane.f32.xlu1 %v2062_v50  ;;  %v2545_v50 = vld [vmem:[%s679_s14] ss:$0 sm:$0xff]  ;;  %s2954_s14 = scalar_lea.vmem %s2302_s29, 256 }
0x1161   : > { %2894 = vrsqrt.f32 %v2067_v55  ;;  %p2955_p6 = scmp.ne.s32.totalorder %s2302_s29, %s2954_s14  ;;  %p2962_p1 = scmp.lt.s32.totalorder %s2954_s14, %s2954_s14 }
0x1163   : > { %p2956_p12 = pnand %p2955_p6, %p3542_p4  ;;  %p2963_p2 = por %p2962_p1, %p2961_p0 }
0x1165   : > { %p2957_p13 = pneg %p2956_p12 }
0x1167   : > { %p2964_p5 = pnand %p2963_p2, %p2957_p13 }
0x116e   : > { %v2895_v62 = vpop.eup %2894 }
0x116f   : > { %v2071_v0 = vmul.f32 %v2895_v62, %v2055_v38 }
0x1171   : > { %v2079_v4 = vmul.f32 %v2532_v1, %v2071_v0 }
0x1173   : > { %v2087_v12 = vadd.f32 %v2533_v7, %v2079_v4 }
0x11e9   : > { %v2064_v56 = vpop.xlane.xlu1 %2063 }
0x11ea   : > { %v2066_v57 = vmul.f32 0.03125, %v2064_v56 }
0x11ec   : > { %v2068_v58 = vadd.f32 1e-05, %v2066_v57 }
0x11ee   : > { %2896 = vrsqrt.f32 %v2068_v58 }
0x11fb   : > { %v2897_v2 = vpop.eup %2896 }
0x11fc   : > { %v2072_v26 = vmul.f32 %v2897_v2, %v2056_v47  ;;  %v2544_v47 = vld [vmem:[%s676_s19] ss:$0 sm:$0xff] }
0x11fe   : > { %v2080_v8 = vmul.f32 %v2532_v1, %v2072_v26 }
0x1200   : > { %v2088_v14 = vadd.f32 %v2533_v7, %v2080_v8 }
0x1202   : > { %v2089_v10 = vpack.c.bf16 %v2088_v14, %v2087_v12 }
0x1204   : > { %2770 = vmatmul.mubr.msk.bf16.vlgmr.msra.gmra.mxu1 %vm722_vm2, %v2089_v10 }
0x12c4   : > { %v2150_v16 = vpop.f32.mrf.mxu1 }
0x12c5   : > { %v2151_v18 = vadd.f32 %v2534_v15, %v2150_v16 }
0x12c6   : > { %v2771_v17 = vpop.f32.mrf.mxu1 }
0x12c7   : > { %v2157_v20 = vmax.f32 %v2151_v18, 0.0 }
0x12c8   : > { %v2153_v19 = vpop.f32.mrf.mxu1 }
0x12c9   : > { %v2154_v60 = vadd.f32 %v2534_v15, %v2153_v19 }
0x12ca   : > { %v2772_v22 = vpop.f32.mrf.mxu1 }
0x12cb   : > { %v2158_v5 = vmax.f32 %v2154_v60, 0.0 }
0x12cd   : > { %v2159_v21 = vpack.c.bf16 %v2158_v5, %v2157_v20 }
0x12cf   : > { %2782 = vmatmul.mubr.msk.bf16.vlgmr.msra.gmra.mxu0 %vm2199_vm5, %v2159_v21 }
0x138f   : > { %v2237_v23 = vpop.f32.mrf.mxu0 }
0x1390   : > { %v2238_v24 = vadd.f32 %v2538_v3, %v2237_v23 }
0x1391   : > { %v2783_v59 = vpop.f32.mrf.mxu0 }
0x1392   : > { %v2244_v25 = vadd.f32 %v2238_v24, %v2087_v12 }
0x1393   : > { %v2240_v27 = vpop.f32.mrf.mxu0 }
0x1394   : > { %v2241_v28 = vadd.f32 %v2538_v3, %v2240_v27  ;;  %v2248_v29 = vsel %vm722_vm2, %v2244_v25, 0.0 }
0x1395   : > { %2249 = vadd.xlane.f32.xlu1 %v2248_v29  ;;  %v2784_v63 = vpop.f32.mrf.mxu0 }
0x1396   : > { %v2245_v30 = vadd.f32 %v2241_v28, %v2088_v14 }
0x1398   : > { %v2251_v61 = vsel %vm722_vm2, %v2245_v30, 0.0 }
0x1399   : > { %2252 = vadd.xlane.f32.xlu1 %v2251_v61 }
0x141e   : > { %v2250_v31 = vpop.xlane.xlu1 %2249 }
0x141f   : > { %v2254_v32 = vmul.f32 0.03125, %v2250_v31 }
0x1421   : > { %v2256_v33 = vsub.f32 %v2244_v25, %v2254_v32 }
0x1422   : > { %v2253_v34 = vpop.xlane.xlu1 %2252 }
0x1423   : > { %v2255_v35 = vmul.f32 0.03125, %v2253_v34  ;;  %v2258_v36 = vmul.f32 %v2256_v33, %v2256_v33 }
0x1425   : > { %v2257_v37 = vsub.f32 %v2245_v30, %v2255_v35  ;;  %v2260_v38 = vsel %vm722_vm2, %v2258_v36, 0.0 }
0x1426   : > { %2261 = vadd.xlane.f32.xlu0 %v2260_v38 }
0x1427   : > { %v2259_v39 = vmul.f32 %v2257_v37, %v2257_v37 }
0x1429   : > { %v2263_v48 = vsel %vm722_vm2, %v2259_v39, 0.0 }
0x142a   : > { %2264 = vadd.xlane.f32.xlu1 %v2263_v48 }
0x14af   : > { %v2262_v40 = vpop.xlane.xlu0 %2261 }
0x14b0   : > { %v2266_v41 = vmul.f32 0.03125, %v2262_v40 }
0x14b2   : > { %v2268_v42 = vadd.f32 1e-05, %v2266_v41 }
0x14b3   : > { %v2265_v43 = vpop.xlane.xlu1 %2264 }
0x14b4   : > { %2898 = vrsqrt.f32 %v2268_v42  ;;  %v2267_v44 = vmul.f32 0.03125, %v2265_v43 }
0x14b6   : > { %v2269_v45 = vadd.f32 1e-05, %v2267_v44 }
0x14b8   : > { %2900 = vrsqrt.f32 %v2269_v45 }
0x14c1   : > { %v2899_v46 = vpop.eup %2898 }
0x14c2   : > { %v2272_v49 = vmul.f32 %v2899_v46, %v2256_v33 }
0x14c4   : > { %v2280_v51 = vmul.f32 %v2544_v47, %v2272_v49 }
0x14c5   : > { %v2901_v52 = vpop.eup %2900 }
0x14c6   : > { %v2273_v6 = vmul.f32 %v2901_v52, %v2257_v37  ;;  %v2288_v53 = vadd.f32 %v2545_v50, %v2280_v51 }
0x14c8   : > { %v2281_v54 = vmul.f32 %v2544_v47, %v2273_v6  ;;  %2290 = vst.msk [vmem:[#allocation7] sm:$0xff] %vm722_vm2, %v2288_v53 }
0x14ca   : > { %v2289_v55 = vadd.f32 %v2545_v50, %v2281_v54 }
0x14cc   : > { %2291 = vst.msk [vmem:[#allocation7 + $0x8] sm:$0xff] %vm722_vm2, %v2289_v55 }
0x14cd   : > { %2967 = shalt.err (!%p2964_p5)
}
0x14ce   : > { %s3032_s16 = smov 128   ;;  %s3033_s19 = smov 8  }
0x14cf   : > { %s3607_s20 = sld [smem:[#allocation18_spill]] }
0x14d5   : > { %2794 = dma.vmem_to_hbm [thread:$0]  (%p3542_p4), %s2302_s29, 256, %s3607_s20, [#allocation4], %s3032_s16, %s3032_s16, %s3033_s19  }
0x14d6   : > { %2999 = dma.done.wait (%p3542_p4), [#allocation4], 256  }
0x14d7   : > { %3001 = vsyncadd (%p3542_p4), [#allocation4], 4294967040 }
0x14d8 PF: > { %s3608_s0 = sld [smem:[#allocation12_spill]] }
0x14d9   : > { %s3609_s29 = sld [smem:[#allocation11_spill]] }
0x14da   : > { %s3610_s30 = sld [smem:[#allocation13_spill]] }
0x14de   : > { %s27_s15 = sadd.s32 1, %s3608_s0  }
0x14df   : > { %p24_p8 = scmp.ge.s32.totalorder %s27_s15, 4  }
0x14e1   :  { %26 = sbr.rel (!%p24_p8) target bundleno = 10 (0xa), region = 151 }
0x14e6   :  { %2317 = vsyncpa [#allocation3], 1 }
0x14e7   :  { %2319 = vsyncpa [#allocation3 + $0x1], 1 }
0x14e8   :  { %2320 = vsyncpa [#allocation6], 1 }
0x14e9   :  { %2321 = vsyncpa [#allocation4], 1 }
0x14ea   :  { %2323 = vsyncpa [#allocation4 + $0x1], 1 }

</bundles_post_ra>
